<compile_context>
chip_gen: v5e
topology: v5e:2x2
jax: 0.10.0
libtpu: 0.0.40
codegen_flags: <defaults>
</compile_context>

<pallas_src>
import functools

import jax
import jax.numpy as jnp
from jax.experimental import pallas as pl
from jax.experimental.pallas import tpu as pltpu

EPS = 1e-5


def _round_up(v, m):
    return (v + m - 1) // m * m


# -----------------------------------------------------------------------------
# Fused Pallas kernels (one grid step == one image)
# -----------------------------------------------------------------------------
def _fused_s1_kernel(x_ref, m_ref, w1_ref, b1_ref, wtap_ref, b2_ref, p1_ref,
                     o_ref, *, Wp, L1):
    """stride==1 block: x -> [identity | 1x1 -> dw3x3 -> 1x1] -> shuffled out."""
    x_raw = x_ref[0]                               # (Mp, Cin), matmul dtype
    x = x_raw.astype(jnp.float32)                  # shifted slices stay on f32
    wdt = wtap_ref.dtype

    # branch2 first 1x1 (+BN folded; channel split folded as zero rows) + ReLU.
    y = jnp.dot(x_raw, w1_ref[...], preferred_element_type=jnp.float32)
    y = jnp.maximum(y + b1_ref[...], 0.0) * m_ref[...]          # (Mp, bf) f32

    # dw3x3(+BN) folded into flgc 1x1(+BN, shuffle): 9 accumulating MXU dots
    # on contiguous sublane slices (off = ki*Wp is aligned since Wp % 8 == 0).
    z = None
    for ki in range(3):
        for kj in range(3):
            t, off = ki * 3 + kj, ki * Wp + kj
            zt = jnp.dot(y[off:off + L1, :].astype(wdt), wtap_ref[t],
                         preferred_element_type=jnp.float32)
            z = zt if z is None else z + zt
    z = jnp.maximum(z + b2_ref[...], 0.0)                       # odd shuffled cols

    # branch1: identity half shifted to output coords, scattered to even cols.
    z1 = jnp.dot(x[Wp + 1:Wp + 1 + L1, :].astype(p1_ref.dtype), p1_ref[...],
                 preferred_element_type=jnp.float32)
    o_ref[0] = (z + z1).astype(o_ref.dtype)


def _fused_s2_kernel(x_ref, m_ref, w1tap_ref, b1_ref, w2a_ref, b2a_ref,
                     w2tap_ref, b2_ref, o_ref, *, offsets, Lout):
    """stride==2 block on the phase-split layout: both branches, shuffled out."""
    x_raw = x_ref[0]                               # (M2, Cin)
    x = x_raw.astype(jnp.float32)
    wdt = w2tap_ref.dtype

    # branch1: dw3x3(stride 2, +BN) folded into flgc 1x1(+BN) -> ReLU.
    z1 = None
    for t, off in enumerate(offsets):
        zt = jnp.dot(x[off:off + Lout, :].astype(wdt), w1tap_ref[t],
                     preferred_element_type=jnp.float32)
        z1 = zt if z1 is None else z1 + zt
    z1 = jnp.maximum(z1 + b1_ref[...], 0.0)                     # even shuffled cols

    # branch2: 1x1 -> ReLU (halo re-zeroed) -> dw3x3(stride 2) folded into
    # flgc 1x1 -> ReLU.
    y = jnp.dot(x_raw, w2a_ref[...], preferred_element_type=jnp.float32)
    y = jnp.maximum(y + b2a_ref[...], 0.0) * m_ref[...]
    z2 = None
    for t, off in enumerate(offsets):
        zt = jnp.dot(y[off:off + Lout, :].astype(wdt), w2tap_ref[t],
                     preferred_element_type=jnp.float32)
        z2 = zt if z2 is None else z2 + zt
    z2 = jnp.maximum(z2 + b2_ref[...], 0.0)                     # odd shuffled cols

    o_ref[0] = (z1 + z2).astype(o_ref.dtype)


# -----------------------------------------------------------------------------
# Parameter folding / glue
# -----------------------------------------------------------------------------
def bn_scale_bias(bn):
    scale = bn["weight"] / jnp.sqrt(bn["var"] + EPS)
    return scale, bn["bias"] - bn["mean"] * scale


def flgc_effective_weight(w_conv, out_map, in_map):
    def binarize(m):
        p = jax.nn.softmax(m, axis=1)
        return (p == p.max(axis=1, keepdims=True)).astype(w_conv.dtype)

    gmap = binarize(out_map) @ binarize(in_map).T            # (Cout, Cin)
    return w_conv * gmap[:, :, None, None]


def _fold_pw(w_oihw, bn):
    """1x1 conv (Cout,Cin,1,1) + frozen BN -> right-matmul W (Cin,Cout), bias (1,Cout)."""
    s, b = bn_scale_bias(bn)
    return jnp.transpose(w_oihw[:, :, 0, 0]) * s[None, :], b.reshape(1, -1)


def _fold_dw(w_dw, bn):
    """Depthwise (C,1,3,3) + frozen BN -> per-tap channel scales (9,C), bias (C,)."""
    c = w_dw.shape[0]
    s, b = bn_scale_bias(bn)
    return jnp.transpose(w_dw[:, 0].reshape(c, 9)) * s[None, :], b


def _scatter_cols(w_ic, b_row, offset):
    """Scatter branch output channel j to shuffled channel 2j+offset (groups=2)."""
    cin, cout = w_ic.shape
    ws = jnp.zeros((cin, 2 * cout), w_ic.dtype).at[:, offset::2].set(w_ic)
    bs = jnp.zeros((1, 2 * cout), b_row.dtype).at[:, offset::2].set(b_row)
    return ws, bs


def _fold_dw_into_pw(wd9c, bd, w_ic, b_row):
    """Fold dw3x3(+BN) into the following 1x1(+BN): per-tap matmul weights."""
    wtap = wd9c[:, :, None] * w_ic[None, :, :]        # (9, Cbr, Cout)
    btot = bd.reshape(1, -1) @ w_ic + b_row           # (1, Cout)
    return wtap, btot


def _compiler_params(act_elems, dtype):
    per_step = act_elems * jnp.dtype(dtype).itemsize
    lim = int(min(64 * 2 ** 20, max(16 * 2 ** 20, 8 * per_step)))
    return pltpu.CompilerParams(dimension_semantics=("parallel",),
                                vmem_limit_bytes=lim)


def inverted_residual_pallas(x_nchw, params, stride):
    assert stride in (1, 2), "Pallas kernel implements stride 1 and 2 only"
    N, Cin, H, W = x_nchw.shape
    dtype = x_nchw.dtype               # matmul operand dtype (f32 or bf16)
    f32 = jnp.float32

    p2 = params["branch2"]
    bf_ = p2["conv1_w"].shape[0]
    C_out = 2 * bf_

    # ---- fold branch2: BN scales, channel shuffle scatter, dw -> 1x1 fold ----
    w2a, b2a = _fold_pw(p2["conv1_w"], p2["bn1"])                    # (Cin2, bf)
    wd2, bd2 = _fold_dw(p2["dw_w"], p2["bn2"])                       # (9,bf),(bf,)
    w2f, b2f = _fold_pw(
        flgc_effective_weight(p2["flgc"]["w"], p2["flgc"]["out_map"],
                              p2["flgc"]["in_map"]), p2["bn3"])      # (bf, bf)
    w2f, b2f = _scatter_cols(w2f, b2f, 1)                            # odd cols
    w2tap, b2tot = _fold_dw_into_pw(wd2, bd2, w2f, b2f)              # (9,bf,2bf)

    if stride == 1:
        assert Cin == C_out, "stride-1 block requires inp == oup"
        # fold the x.chunk(2) channel split into zero weight rows
        w2a = jnp.concatenate([jnp.zeros((bf_, bf_), w2a.dtype), w2a], axis=0)

        Wp = _round_up(W + 2, 8)
        Hp = H + 3
        Mp, L1 = Hp * Wp, H * Wp

        xpad = jnp.pad(x_nchw, ((0, 0), (0, 0), (1, Hp - H - 1), (1, Wp - W - 1)))
        x_in = jnp.transpose(xpad, (0, 2, 3, 1)).reshape(N, Mp, Cin)

        hm = (jnp.arange(Hp) >= 1) & (jnp.arange(Hp) <= H)
        wm = (jnp.arange(Wp) >= 1) & (jnp.arange(Wp) <= W)
        mask = (hm[:, None] & wm[None, :]).astype(f32).reshape(Mp, 1)

        # branch1 identity scatter: input channel j (< bf) -> shuffled col 2j
        p1 = jnp.zeros((Cin, C_out), f32).at[:bf_, 0::2].set(jnp.eye(bf_, dtype=f32))

        kernel = functools.partial(_fused_s1_kernel, Wp=Wp, L1=L1)
        cparams = _compiler_params(Mp * Cin + L1 * C_out, dtype)
        out_flat = pl.pallas_call(
            kernel,
            out_shape=jax.ShapeDtypeStruct((N, L1, C_out), dtype),
            grid=(N,),
            in_specs=[
                pl.BlockSpec((1, Mp, Cin), lambda n: (n, 0, 0)),
                pl.BlockSpec((Mp, 1), lambda n: (0, 0)),
                pl.BlockSpec((Cin, bf_), lambda n: (0, 0)),
                pl.BlockSpec((1, bf_), lambda n: (0, 0)),
                pl.BlockSpec((9, bf_, C_out), lambda n: (0, 0, 0)),
                pl.BlockSpec((1, C_out), lambda n: (0, 0)),
                pl.BlockSpec((Cin, C_out), lambda n: (0, 0)),
            ],
            out_specs=pl.BlockSpec((1, L1, C_out), lambda n: (n, 0, 0)),
            compiler_params=cparams,
        )(x_in, mask, w2a.astype(dtype), b2a,
          w2tap.astype(dtype), b2tot, p1.astype(dtype))
        out_nhwc = out_flat.reshape(N, H, Wp, C_out)[:, :, :W, :]
    else:
        p1b = params["branch1"]
        wd1, bd1 = _fold_dw(p1b["dw_w"], p1b["bn1"])                 # (9, Cin)
        w1f, b1f = _fold_pw(
            flgc_effective_weight(p1b["flgc"]["w"], p1b["flgc"]["out_map"],
                                  p1b["flgc"]["in_map"]), p1b["bn2"])  # (Cin, bf)
        w1f, b1f = _scatter_cols(w1f, b1f, 0)                        # even cols
        w1tap, b1tot = _fold_dw_into_pw(wd1, bd1, w1f, b1f)          # (9,Cin,2bf)

        Ho, Wo = (H - 1) // 2 + 1, (W - 1) // 2 + 1
        Wpe = _round_up(Wo + 1, 8)
        Hs = Ho + 2
        Lp, M2, Lout = Hs * Wpe, 4 * Hs * Wpe, Ho * Wpe

        # phase-split layout: [even-row/even-col; even/odd; odd/even; odd/odd]
        # slabs concatenated along the flat row axis -> strided depthwise taps
        # become contiguous sublane slices evaluated only at output positions.
        xpad = jnp.pad(x_nchw, ((0, 0), (0, 0),
                                (1, 2 * Hs - H - 1), (1, 2 * Wpe - W - 1)))
        xph = jnp.transpose(xpad, (0, 2, 3, 1)).reshape(N, Hs, 2, Wpe, 2, Cin)
        x_in = jnp.transpose(xph, (0, 2, 4, 1, 3, 5)).reshape(N, M2, Cin)

        rm = (jnp.arange(2 * Hs) >= 1) & (jnp.arange(2 * Hs) <= H)
        cm = (jnp.arange(2 * Wpe) >= 1) & (jnp.arange(2 * Wpe) <= W)
        mask = (rm[:, None] & cm[None, :]).astype(f32)
        mask = jnp.transpose(mask.reshape(Hs, 2, Wpe, 2), (1, 3, 0, 2)).reshape(M2, 1)

        # static tap offsets into the phase-split flat layout
        offsets = tuple((2 * (ki % 2) + (kj % 2)) * Lp + (ki // 2) * Wpe + (kj // 2)
                        for ki in range(3) for kj in range(3))

        kernel = functools.partial(_fused_s2_kernel, offsets=offsets, Lout=Lout)
        cparams = _compiler_params(M2 * Cin + Lout * C_out, dtype)
        out_flat = pl.pallas_call(
            kernel,
            out_shape=jax.ShapeDtypeStruct((N, Lout, C_out), dtype),
            grid=(N,),
            in_specs=[
                pl.BlockSpec((1, M2, Cin), lambda n: (n, 0, 0)),
                pl.BlockSpec((M2, 1), lambda n: (0, 0)),
                pl.BlockSpec((9, Cin, C_out), lambda n: (0, 0, 0)),
                pl.BlockSpec((1, C_out), lambda n: (0, 0)),
                pl.BlockSpec((Cin, bf_), lambda n: (0, 0)),
                pl.BlockSpec((1, bf_), lambda n: (0, 0)),
                pl.BlockSpec((9, bf_, C_out), lambda n: (0, 0, 0)),
                pl.BlockSpec((1, C_out), lambda n: (0, 0)),
            ],
            out_specs=pl.BlockSpec((1, Lout, C_out), lambda n: (n, 0, 0)),
            compiler_params=cparams,
        )(x_in, mask, w1tap.astype(dtype), b1tot,
          w2a.astype(dtype), b2a, w2tap.astype(dtype), b2tot)
        out_nhwc = out_flat.reshape(N, Ho, Wpe, C_out)[:, :, :Wo, :]

    # Channels are already shuffled in-kernel; one pass back to NCHW.
    return jnp.transpose(out_nhwc, (0, 3, 1, 2))


# -----------------------------------------------------------------------------
# Deterministic parameter construction (shapes per InvertedResidual.__init__)
# -----------------------------------------------------------------------------
def init_inverted_residual_params(key, inp, oup, stride, groups):
    bf = oup // 2
    keys = iter(jax.random.split(key, 40))

    def bn(c):
        return dict(
            weight=jax.random.uniform(next(keys), (c,), jnp.float32, 0.5, 1.5),
            bias=0.1 * jax.random.normal(next(keys), (c,), jnp.float32),
            mean=0.1 * jax.random.normal(next(keys), (c,), jnp.float32),
            var=jax.random.uniform(next(keys), (c,), jnp.float32, 0.5, 1.5),
        )

    def conv_w(co, ci, k):
        bound = 1.0 / float((ci * k * k) ** 0.5)
        return jax.random.uniform(next(keys), (co, ci, k, k), jnp.float32, -bound, bound)

    def flgc(co, ci):
        return dict(
            out_map=jax.random.normal(next(keys), (co, groups), jnp.float32),
            in_map=jax.random.normal(next(keys), (ci, groups), jnp.float32),
            w=conv_w(co, ci, 1),
        )

    params = {}
    if stride > 1:
        params["branch1"] = dict(dw_w=conv_w(inp, 1, 3), bn1=bn(inp),
                                 flgc=flgc(bf, inp), bn2=bn(bf))
    cin2 = inp if stride > 1 else bf
    params["branch2"] = dict(conv1_w=conv_w(bf, cin2, 1), bn1=bn(bf),
                             dw_w=conv_w(bf, 1, 3), bn2=bn(bf),
                             flgc=flgc(bf, bf), bn3=bn(bf))
    return params


# -----------------------------------------------------------------------------
# Pure-JAX reference (mirrors PyTorch NCHW semantics) for correctness check
# -----------------------------------------------------------------------------
def ref_forward(x, params, stride):
    def bn_apply(y, bn_):
        s = bn_["weight"] / jnp.sqrt(bn_["var"] + EPS)
        b = bn_["bias"] - bn_["mean"] * s
        return y * s[None, :, None, None] + b[None, :, None, None]

    def conv(y, w, st=1, pad=0, groups=1):
        return jax.lax.conv_general_dilated(
            y, w, (st, st), [(pad, pad), (pad, pad)],
            dimension_numbers=("NCHW", "OIHW", "NCHW"), feature_group_count=groups)

    def flgc_conv(y, fl):
        return conv(y, flgc_effective_weight(fl["w"], fl["out_map"], fl["in_map"]))

    def branch2(y):
        p = params["branch2"]
        y = jax.nn.relu(bn_apply(conv(y, p["conv1_w"]), p["bn1"]))
        y = bn_apply(conv(y, p["dw_w"], st=stride, pad=1, groups=y.shape[1]), p["bn2"])
        return jax.nn.relu(bn_apply(flgc_conv(y, p["flgc"]), p["bn3"]))

    if stride == 1:
        c = x.shape[1]
        out = jnp.concatenate([x[:, : c // 2], branch2(x[:, c // 2:])], axis=1)
    else:
        p1 = params["branch1"]
        y1 = bn_apply(conv(x, p1["dw_w"], st=stride, pad=1, groups=x.shape[1]), p1["bn1"])
        y1 = jax.nn.relu(bn_apply(flgc_conv(y1, p1["flgc"]), p1["bn2"]))
        out = jnp.concatenate([y1, branch2(x)], axis=1)

    N, C, H, W = out.shape
    out = out.reshape(N, 2, C // 2, H, W).transpose(0, 2, 1, 3, 4).reshape(N, C, H, W)
    return out


# -----------------------------------------------------------------------------
if __name__ == "__main__":
    key = jax.random.PRNGKey(0)
    k_in, k_p1, k_p2 = jax.random.split(key, 3)

    fwd = jax.jit(inverted_residual_pallas, static_argnames=("stride",))

    configs = [
        dict(inp=16, oup=32, stride=2, groups=4, shape=(2, 16, 8, 8), pkey=k_p1),
        dict(inp=32, oup=32, stride=1, groups=4, shape=(2, 32, 8, 8), pkey=k_p2),
    ]
    for cfg in configs:
        x = jax.random.normal(jax.random.fold_in(k_in, cfg["stride"]),
                              cfg["shape"], jnp.float32)
        params = init_inverted_residual_params(
            cfg["pkey"], cfg["inp"], cfg["oup"], cfg["stride"], cfg["groups"])
        ref = jax.block_until_ready(ref_forward(x, params, cfg["stride"]))

        # f32 path
        out = jax.block_until_ready(fwd(x, params, stride=cfg["stride"]))
        assert out.shape == ref.shape, (out.shape, ref.shape)
        err = float(jnp.max(jnp.abs(out - ref)))
        assert err < 5e-4, f"f32 max abs err {err}"

        # bf16 activation/weight path (v6e/v7x fast path; f32 accumulation)
        x_bf = x.astype(jnp.bfloat16)
        out_bf = jax.block_until_ready(fwd(x_bf, params, stride=cfg["stride"]))
        ref_bf = ref_forward(x_bf.astype(jnp.float32), params, cfg["stride"])
        rel = float(jnp.max(jnp.abs(out_bf.astype(jnp.float32) - ref_bf))
                    / (jnp.max(jnp.abs(ref_bf)) + 1e-6))
        assert rel < 5e-2, f"bf16 rel err {rel}"
    print("KERNEL_OK")
</pallas_src>

<mosaic_0001>
module attributes {stable_mosaic.version = 11 : i64} {
  func.func @_fused_s2_kernel(%arg0: i32, %arg1: memref<1x192x16xf32, #tpu.memory_space<vmem>>, %arg2: memref<192x1xf32, #tpu.memory_space<vmem>>, %arg3: memref<9x16x32xf32, #tpu.memory_space<vmem>>, %arg4: memref<1x32xf32, #tpu.memory_space<vmem>>, %arg5: memref<16x16xf32, #tpu.memory_space<vmem>>, %arg6: memref<1x16xf32, #tpu.memory_space<vmem>>, %arg7: memref<9x16x32xf32, #tpu.memory_space<vmem>>, %arg8: memref<1x32xf32, #tpu.memory_space<vmem>>, %arg9: memref<1x32x32xf32, #tpu.memory_space<vmem>>) attributes {dimension_semantics = [#tpu.dimension_semantics<parallel>], iteration_bounds = array<i64: 2>, scalar_prefetch = 0 : i64, scratch_operands = 0 : i64, tpu.core_type = #tpu.core_type<tc>, window_params = [{transform_indices = @transform_0, window_bounds = array<i64: 1, 192, 16>}, {pipeline_mode = #tpu.pipeline_mode<synchronous>, transform_indices = @transform_1, window_bounds = array<i64: 192, 1>}, {pipeline_mode = #tpu.pipeline_mode<synchronous>, transform_indices = @transform_2, window_bounds = array<i64: 9, 16, 32>}, {pipeline_mode = #tpu.pipeline_mode<synchronous>, transform_indices = @transform_3, window_bounds = array<i64: 1, 32>}, {pipeline_mode = #tpu.pipeline_mode<synchronous>, transform_indices = @transform_4, window_bounds = array<i64: 16, 16>}, {pipeline_mode = #tpu.pipeline_mode<synchronous>, transform_indices = @transform_5, window_bounds = array<i64: 1, 16>}, {pipeline_mode = #tpu.pipeline_mode<synchronous>, transform_indices = @transform_6, window_bounds = array<i64: 9, 16, 32>}, {pipeline_mode = #tpu.pipeline_mode<synchronous>, transform_indices = @transform_7, window_bounds = array<i64: 1, 32>}, {transform_indices = @transform_8, window_bounds = array<i64: 1, 32, 32>}]} {
    %c0 = arith.constant 0 : index
    %c0_0 = arith.constant 0 : index
    %c0_1 = arith.constant 0 : index
    %0 = vector.load %arg1[%c0, %c0_0, %c0_1] : memref<1x192x16xf32, #tpu.memory_space<vmem>>, vector<1x192x16xf32>
    %1 = vector.shape_cast %0 : vector<1x192x16xf32> to vector<192x16xf32>
    %2 = vector.extract_strided_slice %1 {offsets = [0, 0], sizes = [32, 16], strides = [1, 1]} : vector<192x16xf32> to vector<32x16xf32>
    %c0_2 = arith.constant 0 : index
    %c0_3 = arith.constant 0 : index
    %c0_4 = arith.constant 0 : index
    %3 = vector.load %arg3[%c0_2, %c0_3, %c0_4] : memref<9x16x32xf32, #tpu.memory_space<vmem>>, vector<1x16x32xf32>
    %4 = vector.shape_cast %3 : vector<1x16x32xf32> to vector<16x32xf32>
    %cst = arith.constant dense<0.000000e+00> : vector<32x32xf32>
    %5 = tpu.matmul %2, %4, %cst {dimension_numbers = #tpu.dot_dimension_numbers<[1], [0], [0], [1], [0, 0, 1, 1], [], []>} : vector<32x16xf32>, vector<16x32xf32>, vector<32x32xf32> -> vector<32x32xf32>
    %6 = vector.extract_strided_slice %1 {offsets = [48, 0], sizes = [32, 16], strides = [1, 1]} : vector<192x16xf32> to vector<32x16xf32>
    %c1 = arith.constant 1 : index
    %c0_5 = arith.constant 0 : index
    %c0_6 = arith.constant 0 : index
    %7 = vector.load %arg3[%c1, %c0_5, %c0_6] : memref<9x16x32xf32, #tpu.memory_space<vmem>>, vector<1x16x32xf32>
    %8 = vector.shape_cast %7 : vector<1x16x32xf32> to vector<16x32xf32>
    %cst_7 = arith.constant dense<0.000000e+00> : vector<32x32xf32>
    %9 = tpu.matmul %6, %8, %cst_7 {dimension_numbers = #tpu.dot_dimension_numbers<[1], [0], [0], [1], [0, 0, 1, 1], [], []>} : vector<32x16xf32>, vector<16x32xf32>, vector<32x32xf32> -> vector<32x32xf32>
    %10 = arith.addf %5, %9 : vector<32x32xf32>
    %11 = vector.extract_strided_slice %1 {offsets = [1, 0], sizes = [32, 16], strides = [1, 1]} : vector<192x16xf32> to vector<32x16xf32>
    %c2 = arith.constant 2 : index
    %c0_8 = arith.constant 0 : index
    %c0_9 = arith.constant 0 : index
    %12 = vector.load %arg3[%c2, %c0_8, %c0_9] : memref<9x16x32xf32, #tpu.memory_space<vmem>>, vector<1x16x32xf32>
    %13 = vector.shape_cast %12 : vector<1x16x32xf32> to vector<16x32xf32>
    %cst_10 = arith.constant dense<0.000000e+00> : vector<32x32xf32>
    %14 = tpu.matmul %11, %13, %cst_10 {dimension_numbers = #tpu.dot_dimension_numbers<[1], [0], [0], [1], [0, 0, 1, 1], [], []>} : vector<32x16xf32>, vector<16x32xf32>, vector<32x32xf32> -> vector<32x32xf32>
    %15 = arith.addf %10, %14 : vector<32x32xf32>
    %16 = vector.extract_strided_slice %1 {offsets = [96, 0], sizes = [32, 16], strides = [1, 1]} : vector<192x16xf32> to vector<32x16xf32>
    %c3 = arith.constant 3 : index
    %c0_11 = arith.constant 0 : index
    %c0_12 = arith.constant 0 : index
    %17 = vector.load %arg3[%c3, %c0_11, %c0_12] : memref<9x16x32xf32, #tpu.memory_space<vmem>>, vector<1x16x32xf32>
    %18 = vector.shape_cast %17 : vector<1x16x32xf32> to vector<16x32xf32>
    %cst_13 = arith.constant dense<0.000000e+00> : vector<32x32xf32>
    %19 = tpu.matmul %16, %18, %cst_13 {dimension_numbers = #tpu.dot_dimension_numbers<[1], [0], [0], [1], [0, 0, 1, 1], [], []>} : vector<32x16xf32>, vector<16x32xf32>, vector<32x32xf32> -> vector<32x32xf32>
    %20 = arith.addf %15, %19 : vector<32x32xf32>
    %21 = vector.extract_strided_slice %1 {offsets = [144, 0], sizes = [32, 16], strides = [1, 1]} : vector<192x16xf32> to vector<32x16xf32>
    %c4 = arith.constant 4 : index
    %c0_14 = arith.constant 0 : index
    %c0_15 = arith.constant 0 : index
    %22 = vector.load %arg3[%c4, %c0_14, %c0_15] : memref<9x16x32xf32, #tpu.memory_space<vmem>>, vector<1x16x32xf32>
    %23 = vector.shape_cast %22 : vector<1x16x32xf32> to vector<16x32xf32>
    %cst_16 = arith.constant dense<0.000000e+00> : vector<32x32xf32>
    %24 = tpu.matmul %21, %23, %cst_16 {dimension_numbers = #tpu.dot_dimension_numbers<[1], [0], [0], [1], [0, 0, 1, 1], [], []>} : vector<32x16xf32>, vector<16x32xf32>, vector<32x32xf32> -> vector<32x32xf32>
    %25 = arith.addf %20, %24 : vector<32x32xf32>
    %26 = vector.extract_strided_slice %1 {offsets = [97, 0], sizes = [32, 16], strides = [1, 1]} : vector<192x16xf32> to vector<32x16xf32>
    %c5 = arith.constant 5 : index
    %c0_17 = arith.constant 0 : index
    %c0_18 = arith.constant 0 : index
    %27 = vector.load %arg3[%c5, %c0_17, %c0_18] : memref<9x16x32xf32, #tpu.memory_space<vmem>>, vector<1x16x32xf32>
    %28 = vector.shape_cast %27 : vector<1x16x32xf32> to vector<16x32xf32>
    %cst_19 = arith.constant dense<0.000000e+00> : vector<32x32xf32>
    %29 = tpu.matmul %26, %28, %cst_19 {dimension_numbers = #tpu.dot_dimension_numbers<[1], [0], [0], [1], [0, 0, 1, 1], [], []>} : vector<32x16xf32>, vector<16x32xf32>, vector<32x32xf32> -> vector<32x32xf32>
    %30 = arith.addf %25, %29 : vector<32x32xf32>
    %31 = vector.extract_strided_slice %1 {offsets = [8, 0], sizes = [32, 16], strides = [1, 1]} : vector<192x16xf32> to vector<32x16xf32>
    %c6 = arith.constant 6 : index
    %c0_20 = arith.constant 0 : index
    %c0_21 = arith.constant 0 : index
    %32 = vector.load %arg3[%c6, %c0_20, %c0_21] : memref<9x16x32xf32, #tpu.memory_space<vmem>>, vector<1x16x32xf32>
    %33 = vector.shape_cast %32 : vector<1x16x32xf32> to vector<16x32xf32>
    %cst_22 = arith.constant dense<0.000000e+00> : vector<32x32xf32>
    %34 = tpu.matmul %31, %33, %cst_22 {dimension_numbers = #tpu.dot_dimension_numbers<[1], [0], [0], [1], [0, 0, 1, 1], [], []>} : vector<32x16xf32>, vector<16x32xf32>, vector<32x32xf32> -> vector<32x32xf32>
    %35 = arith.addf %30, %34 : vector<32x32xf32>
    %36 = vector.extract_strided_slice %1 {offsets = [56, 0], sizes = [32, 16], strides = [1, 1]} : vector<192x16xf32> to vector<32x16xf32>
    %c7 = arith.constant 7 : index
    %c0_23 = arith.constant 0 : index
    %c0_24 = arith.constant 0 : index
    %37 = vector.load %arg3[%c7, %c0_23, %c0_24] : memref<9x16x32xf32, #tpu.memory_space<vmem>>, vector<1x16x32xf32>
    %38 = vector.shape_cast %37 : vector<1x16x32xf32> to vector<16x32xf32>
    %cst_25 = arith.constant dense<0.000000e+00> : vector<32x32xf32>
    %39 = tpu.matmul %36, %38, %cst_25 {dimension_numbers = #tpu.dot_dimension_numbers<[1], [0], [0], [1], [0, 0, 1, 1], [], []>} : vector<32x16xf32>, vector<16x32xf32>, vector<32x32xf32> -> vector<32x32xf32>
    %40 = arith.addf %35, %39 : vector<32x32xf32>
    %41 = vector.extract_strided_slice %1 {offsets = [9, 0], sizes = [32, 16], strides = [1, 1]} : vector<192x16xf32> to vector<32x16xf32>
    %c8 = arith.constant 8 : index
    %c0_26 = arith.constant 0 : index
    %c0_27 = arith.constant 0 : index
    %42 = vector.load %arg3[%c8, %c0_26, %c0_27] : memref<9x16x32xf32, #tpu.memory_space<vmem>>, vector<1x16x32xf32>
    %43 = vector.shape_cast %42 : vector<1x16x32xf32> to vector<16x32xf32>
    %cst_28 = arith.constant dense<0.000000e+00> : vector<32x32xf32>
    %44 = tpu.matmul %41, %43, %cst_28 {dimension_numbers = #tpu.dot_dimension_numbers<[1], [0], [0], [1], [0, 0, 1, 1], [], []>} : vector<32x16xf32>, vector<16x32xf32>, vector<32x32xf32> -> vector<32x32xf32>
    %45 = arith.addf %40, %44 : vector<32x32xf32>
    %c0_29 = arith.constant 0 : index
    %c0_30 = arith.constant 0 : index
    %46 = vector.load %arg4[%c0_29, %c0_30] : memref<1x32xf32, #tpu.memory_space<vmem>>, vector<1x32xf32>
    %47 = vector.broadcast %46 : vector<1x32xf32> to vector<32x32xf32>
    %48 = arith.addf %45, %47 : vector<32x32xf32>
    %cst_31 = arith.constant 0.000000e+00 : f32
    %49 = vector.broadcast %cst_31 : f32 to vector<32x32xf32>
    %50 = arith.maximumf %48, %49 : vector<32x32xf32>
    %c0_32 = arith.constant 0 : index
    %c0_33 = arith.constant 0 : index
    %51 = vector.load %arg5[%c0_32, %c0_33] : memref<16x16xf32, #tpu.memory_space<vmem>>, vector<16x16xf32>
    %cst_34 = arith.constant dense<0.000000e+00> : vector<192x16xf32>
    %52 = tpu.matmul %1, %51, %cst_34 {dimension_numbers = #tpu.dot_dimension_numbers<[1], [0], [0], [1], [0, 0, 1, 1], [], []>} : vector<192x16xf32>, vector<16x16xf32>, vector<192x16xf32> -> vector<192x16xf32>
    %c0_35 = arith.constant 0 : index
    %c0_36 = arith.constant 0 : index
    %53 = vector.load %arg6[%c0_35, %c0_36] : memref<1x16xf32, #tpu.memory_space<vmem>>, vector<1x16xf32>
    %54 = vector.broadcast %53 : vector<1x16xf32> to vector<192x16xf32>
    %55 = arith.addf %52, %54 : vector<192x16xf32>
    %cst_37 = arith.constant 0.000000e+00 : f32
    %56 = vector.broadcast %cst_37 : f32 to vector<192x16xf32>
    %57 = arith.maximumf %55, %56 : vector<192x16xf32>
    %c0_38 = arith.constant 0 : index
    %c0_39 = arith.constant 0 : index
    %58 = vector.load %arg2[%c0_38, %c0_39] : memref<192x1xf32, #tpu.memory_space<vmem>>, vector<192x1xf32>
    %59 = vector.broadcast %58 : vector<192x1xf32> to vector<192x16xf32>
    %60 = arith.mulf %57, %59 : vector<192x16xf32>
    %61 = vector.extract_strided_slice %60 {offsets = [0, 0], sizes = [32, 16], strides = [1, 1]} : vector<192x16xf32> to vector<32x16xf32>
    %c0_40 = arith.constant 0 : index
    %c0_41 = arith.constant 0 : index
    %c0_42 = arith.constant 0 : index
    %62 = vector.load %arg7[%c0_40, %c0_41, %c0_42] : memref<9x16x32xf32, #tpu.memory_space<vmem>>, vector<1x16x32xf32>
    %63 = vector.shape_cast %62 : vector<1x16x32xf32> to vector<16x32xf32>
    %cst_43 = arith.constant dense<0.000000e+00> : vector<32x32xf32>
    %64 = tpu.matmul %61, %63, %cst_43 {dimension_numbers = #tpu.dot_dimension_numbers<[1], [0], [0], [1], [0, 0, 1, 1], [], []>} : vector<32x16xf32>, vector<16x32xf32>, vector<32x32xf32> -> vector<32x32xf32>
    %65 = vector.extract_strided_slice %60 {offsets = [48, 0], sizes = [32, 16], strides = [1, 1]} : vector<192x16xf32> to vector<32x16xf32>
    %c1_44 = arith.constant 1 : index
    %c0_45 = arith.constant 0 : index
    %c0_46 = arith.constant 0 : index
    %66 = vector.load %arg7[%c1_44, %c0_45, %c0_46] : memref<9x16x32xf32, #tpu.memory_space<vmem>>, vector<1x16x32xf32>
    %67 = vector.shape_cast %66 : vector<1x16x32xf32> to vector<16x32xf32>
    %cst_47 = arith.constant dense<0.000000e+00> : vector<32x32xf32>
    %68 = tpu.matmul %65, %67, %cst_47 {dimension_numbers = #tpu.dot_dimension_numbers<[1], [0], [0], [1], [0, 0, 1, 1], [], []>} : vector<32x16xf32>, vector<16x32xf32>, vector<32x32xf32> -> vector<32x32xf32>
    %69 = arith.addf %64, %68 : vector<32x32xf32>
    %70 = vector.extract_strided_slice %60 {offsets = [1, 0], sizes = [32, 16], strides = [1, 1]} : vector<192x16xf32> to vector<32x16xf32>
    %c2_48 = arith.constant 2 : index
    %c0_49 = arith.constant 0 : index
    %c0_50 = arith.constant 0 : index
    %71 = vector.load %arg7[%c2_48, %c0_49, %c0_50] : memref<9x16x32xf32, #tpu.memory_space<vmem>>, vector<1x16x32xf32>
    %72 = vector.shape_cast %71 : vector<1x16x32xf32> to vector<16x32xf32>
    %cst_51 = arith.constant dense<0.000000e+00> : vector<32x32xf32>
    %73 = tpu.matmul %70, %72, %cst_51 {dimension_numbers = #tpu.dot_dimension_numbers<[1], [0], [0], [1], [0, 0, 1, 1], [], []>} : vector<32x16xf32>, vector<16x32xf32>, vector<32x32xf32> -> vector<32x32xf32>
    %74 = arith.addf %69, %73 : vector<32x32xf32>
    %75 = vector.extract_strided_slice %60 {offsets = [96, 0], sizes = [32, 16], strides = [1, 1]} : vector<192x16xf32> to vector<32x16xf32>
    %c3_52 = arith.constant 3 : index
    %c0_53 = arith.constant 0 : index
    %c0_54 = arith.constant 0 : index
    %76 = vector.load %arg7[%c3_52, %c0_53, %c0_54] : memref<9x16x32xf32, #tpu.memory_space<vmem>>, vector<1x16x32xf32>
    %77 = vector.shape_cast %76 : vector<1x16x32xf32> to vector<16x32xf32>
    %cst_55 = arith.constant dense<0.000000e+00> : vector<32x32xf32>
    %78 = tpu.matmul %75, %77, %cst_55 {dimension_numbers = #tpu.dot_dimension_numbers<[1], [0], [0], [1], [0, 0, 1, 1], [], []>} : vector<32x16xf32>, vector<16x32xf32>, vector<32x32xf32> -> vector<32x32xf32>
    %79 = arith.addf %74, %78 : vector<32x32xf32>
    %80 = vector.extract_strided_slice %60 {offsets = [144, 0], sizes = [32, 16], strides = [1, 1]} : vector<192x16xf32> to vector<32x16xf32>
    %c4_56 = arith.constant 4 : index
    %c0_57 = arith.constant 0 : index
    %c0_58 = arith.constant 0 : index
    %81 = vector.load %arg7[%c4_56, %c0_57, %c0_58] : memref<9x16x32xf32, #tpu.memory_space<vmem>>, vector<1x16x32xf32>
    %82 = vector.shape_cast %81 : vector<1x16x32xf32> to vector<16x32xf32>
    %cst_59 = arith.constant dense<0.000000e+00> : vector<32x32xf32>
    %83 = tpu.matmul %80, %82, %cst_59 {dimension_numbers = #tpu.dot_dimension_numbers<[1], [0], [0], [1], [0, 0, 1, 1], [], []>} : vector<32x16xf32>, vector<16x32xf32>, vector<32x32xf32> -> vector<32x32xf32>
    %84 = arith.addf %79, %83 : vector<32x32xf32>
    %85 = vector.extract_strided_slice %60 {offsets = [97, 0], sizes = [32, 16], strides = [1, 1]} : vector<192x16xf32> to vector<32x16xf32>
    %c5_60 = arith.constant 5 : index
    %c0_61 = arith.constant 0 : index
    %c0_62 = arith.constant 0 : index
    %86 = vector.load %arg7[%c5_60, %c0_61, %c0_62] : memref<9x16x32xf32, #tpu.memory_space<vmem>>, vector<1x16x32xf32>
    %87 = vector.shape_cast %86 : vector<1x16x32xf32> to vector<16x32xf32>
    %cst_63 = arith.constant dense<0.000000e+00> : vector<32x32xf32>
    %88 = tpu.matmul %85, %87, %cst_63 {dimension_numbers = #tpu.dot_dimension_numbers<[1], [0], [0], [1], [0, 0, 1, 1], [], []>} : vector<32x16xf32>, vector<16x32xf32>, vector<32x32xf32> -> vector<32x32xf32>
    %89 = arith.addf %84, %88 : vector<32x32xf32>
    %90 = vector.extract_strided_slice %60 {offsets = [8, 0], sizes = [32, 16], strides = [1, 1]} : vector<192x16xf32> to vector<32x16xf32>
    %c6_64 = arith.constant 6 : index
    %c0_65 = arith.constant 0 : index
    %c0_66 = arith.constant 0 : index
    %91 = vector.load %arg7[%c6_64, %c0_65, %c0_66] : memref<9x16x32xf32, #tpu.memory_space<vmem>>, vector<1x16x32xf32>
    %92 = vector.shape_cast %91 : vector<1x16x32xf32> to vector<16x32xf32>
    %cst_67 = arith.constant dense<0.000000e+00> : vector<32x32xf32>
    %93 = tpu.matmul %90, %92, %cst_67 {dimension_numbers = #tpu.dot_dimension_numbers<[1], [0], [0], [1], [0, 0, 1, 1], [], []>} : vector<32x16xf32>, vector<16x32xf32>, vector<32x32xf32> -> vector<32x32xf32>
    %94 = arith.addf %89, %93 : vector<32x32xf32>
    %95 = vector.extract_strided_slice %60 {offsets = [56, 0], sizes = [32, 16], strides = [1, 1]} : vector<192x16xf32> to vector<32x16xf32>
    %c7_68 = arith.constant 7 : index
    %c0_69 = arith.constant 0 : index
    %c0_70 = arith.constant 0 : index
    %96 = vector.load %arg7[%c7_68, %c0_69, %c0_70] : memref<9x16x32xf32, #tpu.memory_space<vmem>>, vector<1x16x32xf32>
    %97 = vector.shape_cast %96 : vector<1x16x32xf32> to vector<16x32xf32>
    %cst_71 = arith.constant dense<0.000000e+00> : vector<32x32xf32>
    %98 = tpu.matmul %95, %97, %cst_71 {dimension_numbers = #tpu.dot_dimension_numbers<[1], [0], [0], [1], [0, 0, 1, 1], [], []>} : vector<32x16xf32>, vector<16x32xf32>, vector<32x32xf32> -> vector<32x32xf32>
    %99 = arith.addf %94, %98 : vector<32x32xf32>
    %100 = vector.extract_strided_slice %60 {offsets = [9, 0], sizes = [32, 16], strides = [1, 1]} : vector<192x16xf32> to vector<32x16xf32>
    %c8_72 = arith.constant 8 : index
    %c0_73 = arith.constant 0 : index
    %c0_74 = arith.constant 0 : index
    %101 = vector.load %arg7[%c8_72, %c0_73, %c0_74] : memref<9x16x32xf32, #tpu.memory_space<vmem>>, vector<1x16x32xf32>
    %102 = vector.shape_cast %101 : vector<1x16x32xf32> to vector<16x32xf32>
    %cst_75 = arith.constant dense<0.000000e+00> : vector<32x32xf32>
    %103 = tpu.matmul %100, %102, %cst_75 {dimension_numbers = #tpu.dot_dimension_numbers<[1], [0], [0], [1], [0, 0, 1, 1], [], []>} : vector<32x16xf32>, vector<16x32xf32>, vector<32x32xf32> -> vector<32x32xf32>
    %104 = arith.addf %99, %103 : vector<32x32xf32>
    %c0_76 = arith.constant 0 : index
    %c0_77 = arith.constant 0 : index
    %105 = vector.load %arg8[%c0_76, %c0_77] : memref<1x32xf32, #tpu.memory_space<vmem>>, vector<1x32xf32>
    %106 = vector.broadcast %105 : vector<1x32xf32> to vector<32x32xf32>
    %107 = arith.addf %104, %106 : vector<32x32xf32>
    %cst_78 = arith.constant 0.000000e+00 : f32
    %108 = vector.broadcast %cst_78 : f32 to vector<32x32xf32>
    %109 = arith.maximumf %107, %108 : vector<32x32xf32>
    %110 = arith.addf %50, %109 : vector<32x32xf32>
    %c0_79 = arith.constant 0 : index
    %c0_80 = arith.constant 0 : index
    %c0_81 = arith.constant 0 : index
    %111 = vector.load %arg9[%c0_79, %c0_80, %c0_81] : memref<1x32x32xf32, #tpu.memory_space<vmem>>, vector<1x32x32xf32>
    %112 = vector.shape_cast %111 : vector<1x32x32xf32> to vector<32x32xf32>
    %113 = vector.shape_cast %110 : vector<32x32xf32> to vector<1x32x32xf32>
    tpu.vector_store %arg9[%c0_79, %c0_80, %c0_81], %113 {strides = array<i32>} : memref<1x32x32xf32, #tpu.memory_space<vmem>>, vector<1x32x32xf32>,
    return
  }
  func.func @transform_0(%arg0: i32) -> (i32, i32, i32) {
    %c0_i32 = arith.constant 0 : i32
    %c0_i32_0 = arith.constant 0 : i32
    %c0_i32_1 = arith.constant 0 : i32
    return %arg0, %c0_i32, %c0_i32_0 : i32, i32, i32
  }
  func.func @transform_1(%arg0: i32) -> (i32, i32) {
    %c0_i32 = arith.constant 0 : i32
    %c0_i32_0 = arith.constant 0 : i32
    %c0_i32_1 = arith.constant 0 : i32
    return %c0_i32, %c0_i32_0 : i32, i32
  }
  func.func @transform_2(%arg0: i32) -> (i32, i32, i32) {
    %c0_i32 = arith.constant 0 : i32
    %c0_i32_0 = arith.constant 0 : i32
    %c0_i32_1 = arith.constant 0 : i32
    %c0_i32_2 = arith.constant 0 : i32
    return %c0_i32, %c0_i32_0, %c0_i32_1 : i32, i32, i32
  }
  func.func @transform_3(%arg0: i32) -> (i32, i32) {
    %c0_i32 = arith.constant 0 : i32
    %c0_i32_0 = arith.constant 0 : i32
    %c0_i32_1 = arith.constant 0 : i32
    return %c0_i32, %c0_i32_0 : i32, i32
  }
  func.func @transform_4(%arg0: i32) -> (i32, i32) {
    %c0_i32 = arith.constant 0 : i32
    %c0_i32_0 = arith.constant 0 : i32
    %c0_i32_1 = arith.constant 0 : i32
    return %c0_i32, %c0_i32_0 : i32, i32
  }
  func.func @transform_5(%arg0: i32) -> (i32, i32) {
    %c0_i32 = arith.constant 0 : i32
    %c0_i32_0 = arith.constant 0 : i32
    %c0_i32_1 = arith.constant 0 : i32
    return %c0_i32, %c0_i32_0 : i32, i32
  }
  func.func @transform_6(%arg0: i32) -> (i32, i32, i32) {
    %c0_i32 = arith.constant 0 : i32
    %c0_i32_0 = arith.constant 0 : i32
    %c0_i32_1 = arith.constant 0 : i32
    %c0_i32_2 = arith.constant 0 : i32
    return %c0_i32, %c0_i32_0, %c0_i32_1 : i32, i32, i32
  }
  func.func @transform_7(%arg0: i32) -> (i32, i32) {
    %c0_i32 = arith.constant 0 : i32
    %c0_i32_0 = arith.constant 0 : i32
    %c0_i32_1 = arith.constant 0 : i32
    return %c0_i32, %c0_i32_0 : i32, i32
  }
  func.func @transform_8(%arg0: i32) -> (i32, i32, i32) {
    %c0_i32 = arith.constant 0 : i32
    %c0_i32_0 = arith.constant 0 : i32
    %c0_i32_1 = arith.constant 0 : i32
    return %arg0, %c0_i32, %c0_i32_0 : i32, i32, i32
  }
}

</mosaic_0001>

<bundles_post_ra>
// kernel: squeeze.8
= control target key start
LH: loop header
LB: loop body
LE: loop exit
PB: predicated region body
PF: predicated region fallthrough
CT: control target
= control target key end

     0   :  { %vm15_vm0 = vcmask 130048   ;;  %s59_s0 = inlined_call_operand.vmem [shape: f32[16,3,3], index: 0, kind: input, shape index: {}]   ;;  %s60_s1 = inlined_call_operand.vmem [shape: f32[16,9], index: 1, kind: output, shape index: {}]  }
   0x1   :  { %v27_v0 = vld [vmem:[%s59_s0 + $0x8] sm:$0xf]  ;;  %v28_v1 = vld [vmem:[%s59_s0 + $0x4] sm:$0xf]  ;;  %v12_v2 = vld [vmem:[%s59_s0] sm:$0xf] }
   0x2   :  { %7 = vst [vmem:[#allocation0] sm:$0xf] %v27_v0 }
   0x3   :  { %11 = vst [vmem:[#allocation0 + $0x10] sm:$0xf] %v28_v1 }
   0x4   :  { %13 = vst [vmem:[#allocation0 + $0x8] sm:$0xf] %v12_v2 }
   0x9   :  { %v23_v3 = vld [vmem:[#allocation0] sm:$0x7]  }
   0xa   :  { %v18_v4 = vld [vmem:[#allocation0 + $0x10] sm:$0x7]   ;;  %30 = vst.msk [vmem:[%s60_s1 + $0x6] sm:$0x7] %vm15_vm0, %v23_v3  }
   0xb   :  { %v14_v5 = vld [vmem:[#allocation0 + $0x8] sm:$0x7]   ;;  %29 = vst.msk [vmem:[%s60_s1 + $0x3] sm:$0x7] %vm15_vm0, %v18_v4  }
   0xc   :  { %16 = vst.msk [vmem:[%s60_s1] sm:$0x7] %vm15_vm0, %v14_v5  }

// kernel: inverted_residual_pallas.1
= control target key start
LH: loop header
LB: loop body
LE: loop exit
PB: predicated region body
PF: predicated region fallthrough
CT: control target
= control target key end

     0   :  { %s1714_s27 = smov 0   ;;  %s2298_s0 = inlined_call_operand.vmem [shape: f32[2,192,16], index: 0, kind: input, shape index: {}]   ;;  %s2299_s1 = inlined_call_operand.vmem [shape: f32[192,1], index: 1, kind: input, shape index: {}]   ;;  %s2300_s2 = inlined_call_operand.vmem [shape: f32[9,16,32], index: 2, kind: input, shape index: {}]   ;;  %s2301_s3 = inlined_call_operand.vmem [shape: f32[1,32], index: 3, kind: input, shape index: {}]   ;;  %s2302_s4 = inlined_call_operand.vmem [shape: f32[16,16], index: 4, kind: input, shape index: {}]   ;;  %s2303_s5 = inlined_call_operand.vmem [shape: f32[1,16], index: 5, kind: input, shape index: {}]   ;;  %s2304_s6 = inlined_call_operand.vmem [shape: f32[9,16,32], index: 6, kind: input, shape index: {}]   ;;  %s2305_s7 = inlined_call_operand.vmem [shape: f32[1,32], index: 7, kind: input, shape index: {}]   ;;  %s2306_s8 = inlined_call_operand.vmem [shape: f32[2,32,32], index: 8, kind: output, shape index: {}]  }
   0x1 LB: > { %s1505_s28 = sadd.s32 4294967295, %s1666_s27   ;;  %p1509_p0 = scmp.ge.s32.totalorder %s1666_s27, 1  ;;  %s1666_s27 = sphi %s1714_s27, %s18_s27  }
   0x2   : > { %p262_p1 = scmp.lt.s32.totalorder %s1666_s27, 3 }
   0x4   : > { %p263_p2 = pnand %p1509_p0, %p262_p1 }
   0x5   : > { %p296_p3 = scmp.lt.s32.totalorder (!%p263_p2), %s1505_s28, 1 }
   0x6   : > { %266 = sbr.rel (%p263_p2) target bundleno = 491 (0x1eb), region = 52 }
   0xb   : > { %v754_v0 = vld [vmem:[%s2302_s4 + $0x8] sm:$0xff]  ;;  %v753_v1 = vld [vmem:[%s2302_s4] sm:$0xff]  ;;  %v886_v2 = vld [vmem:[%s2299_s1 + $0x30] sm:$0xff]  ;;  %v1668_v3 = vmov 0   ;;  %s2308_s28 = smov (!%p296_p3, %s1505_s28), 1  ;;  %vm335_vm0 = vcmask 130048  }
   0xc   : > { %789 = vmatpush.msra.mxu1 %v754_v0  ;;  %1655 = vset.pattern.permute.xlu1 %v1668_v3  ;;  %v881_v4 = vld [vmem:[%s2299_s1 + $0x8] sm:$0xff]  ;;  %s1644_s15 = smul.u32 192, %s2308_s28  ;;  %v887_v6 = vld [vmem:[%s2299_s1 + $0x38] sm:$0xff]  ;;  %v880_v7 = vld [vmem:[%s2299_s1] sm:$0xff]  ;;  %vm422_vm1 = vcmask 1046528   ;;  %s1643_s17 = sshll.u32 %s2308_s28, 5 }
   0xd   : > { %1654 = vset.pattern.permute.xlu0 %v1668_v3  ;;  %907 = vperm.xlu1 %1655, %v881_v4   ;;  %v1530_v8 = vld [vmem:[%s2300_s2 + $0x38] sm:$0xff]  ;;  %v1529_v9 = vld [vmem:[%s2300_s2 + $0x30] sm:$0xff]  ;;  %v889_v12 = vld [vmem:[%s2299_s1 + $0x48] sm:$0xff]  ;;  %s2282_s21 = scalar_lea.vmem %s2306_s8, %s1643_s17  ;;  %vm1445_vm2 = vcmask 261120  }
   0xe   : > { %790 = vmatpush.msra.mxu1 %v753_v1  ;;  %932 = vperm.xlu0 %1654, %v886_v2   ;;  %s1740_s18 = scalar_lea.vmem %s2298_s0, %s1644_s15  ;;  %v883_v13 = vld [vmem:[%s2299_s1 + $0x18] sm:$0xff]  ;;  %v1513_v15 = vld [vmem:[%s2300_s2 + $0x10] sm:$0xff]  ;;  %v888_v25 = vld [vmem:[%s2299_s1 + $0x40] sm:$0xff] }
   0xf   : > { %1656 = vset.pattern.permute.xlu2 %v1668_v3  ;;  %v1743_v5 = vld [vmem:[%s1740_s18] sm:$0xff]  ;;  %502 = vmatpush.msra.mxu3 %v1530_v8  ;;  %v1765_v11 = vld [vmem:[%s1740_s18 + $0x8] sm:$0xff]  ;;  %v1514_v14 = vld [vmem:[%s2300_s2 + $0x18] sm:$0xff] }
  0x10   : > { %1565 = vmatmul.msk.f32.vlgmr.msra.gmra.mxu1 %vm335_vm0, %v1743_v5  ;;  %v1760_v10 = vld [vmem:[%s1740_s18 + $0x60] sm:$0xff]  ;;  %362 = vmatpush.msra.mxu0 %v1514_v14  ;;  %v1782_v16 = vld [vmem:[%s1740_s18 + $0x68] sm:$0xff]  ;;  %v312_v17 = vld [vmem:[%s1740_s18 + $0x30] sm:$0xff]  ;;  %v424_v60 = vrot.slane %v1765_v11, 1  ;;  %v423_v1 = vrot.slane %v1743_v5, 1 }
  0x11   : > { %503 = vmatpush.msra.mxu3 %v1529_v9  ;;  %v1789_v18 = vld [vmem:[%s1740_s18 + $0x10] sm:$0xff]  ;;  %v1803_v22 = vld [vmem:[%s1740_s18 + $0x38] sm:$0xff]  ;;  %v1824_v27 = vld [vmem:[%s1740_s18 + $0x40] sm:$0xff]  ;;  %v573_v29 = vrot.slane %v1760_v10, 1  ;;  %v574_v30 = vrot.slane %v1782_v16, 1 }
  0x12   : > { %1531 = vmatmul.msk.f32.vlgmr.msra.gmra.mxu3 %vm335_vm0, %v1760_v10  ;;  %363 = vmatpush.msra.mxu0 %v1513_v15  ;;  %v896_v19 = vld [vmem:[%s2299_s1 + $0x90] sm:$0xff]  ;;  %v1810_v23 = vld [vmem:[%s1740_s18 + $0x18] sm:$0xff]  ;;  %v1831_v28 = vld [vmem:[%s1740_s18 + $0x20] sm:$0xff]  ;;  %v426_v61 = vrot.slane %v1789_v18, 1 }
  0x13   : > { %1515 = vmatmul.msk.f32.vlgmr.msra.gmra.mxu0 %vm335_vm0, %v312_v17  ;;  %v882_v20 = vld [vmem:[%s2299_s1 + $0x10] sm:$0xff]  ;;  %v1821_v26 = vld [vmem:[%s1740_s18 + $0x78] sm:$0xff]  ;;  %v899_v31 = vld [vmem:[%s2299_s1 + $0xa8] sm:$0xff]  ;;  %v575_v35 = vsel %vm422_vm1, %v573_v29, %v574_v30  ;;  %v430_v9 = vrot.slane %v1831_v28, 1 }
  0x14   : > { %v1800_v21 = vld [vmem:[%s1740_s18 + $0x70] sm:$0xff]  ;;  %912 = vperm.xlu2 %1656, %v882_v20   ;;  %v1542_v32 = vld [vmem:[%s2300_s2 + $0x58] sm:$0xff]  ;;  %v884_v34 = vld [vmem:[%s2299_s1 + $0x20] sm:$0xff]  ;;  %v578_v46 = vrot.slane %v1821_v26, 1  ;;  %v427_v0 = vsel %vm422_vm1, %v424_v60, %v426_v61 }
  0x15   : > { %937 = vperm.xlu1 %1655, %v887_v6   ;;  %v893_v24 = vld [vmem:[%s2299_s1 + $0x70] sm:$0xff]  ;;  %604 = vmatpush.msrb.mxu3 %v1542_v32  ;;  %v891_v36 = vld [vmem:[%s2299_s1 + $0x60] sm:$0xff]  ;;  %v1854_v37 = vld [vmem:[%s1740_s18 + $0x48] sm:$0xff]  ;;  %v576_v39 = vrot.slane %v1800_v21, 1  ;;  %v428_v6 = vrot.slane %v1810_v23, 1 }
  0x16   : > { %902 = vperm.xlu0 %1654, %v880_v7   ;;  %v1541_v33 = vld [vmem:[%s2300_s2 + $0x50] sm:$0xff]  ;;  %v1860_v38 = vld [vmem:[%s1740_s18 + $0x28] sm:$0xff]  ;;  %v1535_v42 = vld [vmem:[%s2300_s2 + $0x40] sm:$0xff]  ;;  %v425_v7 = vsel %vm422_vm1, %v423_v1, %v424_v60 }
  0x17   : > { %605 = vmatpush.msrb.mxu3 %v1541_v33  ;;  %v885_v40 = vld [vmem:[%s2299_s1 + $0x28] sm:$0xff]  ;;  %v897_v43 = vld [vmem:[%s2299_s1 + $0x98] sm:$0xff]  ;;  %v577_v44 = vsel %vm422_vm1, %v574_v30, %v576_v39  ;;  %v1879_v45 = vld [vmem:[%s1740_s18 + $0x90] sm:$0xff]  ;;  %v579_v50 = vsel %vm422_vm1, %v576_v39, %v578_v46  ;;  %v704_v14 = vrot.slane %v1860_v38, 1 }
  0x18   : > { %1566 = vmatmul.msk.f32.gmra.mxu1 %vm335_vm0, %v1765_v11  ;;  %v1536_v41 = vld [vmem:[%s2300_s2 + $0x48] sm:$0xff]  ;;  %v330_v48 = vld [vmem:[%s2300_s2] sm:$0xff]  ;;  %v894_v49 = vld [vmem:[%s2299_s1 + $0x78] sm:$0xff] }
  0x19   : > { %550 = vmatpush.msrb.mxu0 %v1536_v41  ;;  %v331_v47 = vld [vmem:[%s2300_s2 + $0x8] sm:$0xff]  ;;  %v1897_v51 = vld [vmem:[%s1740_s18 + $0x98] sm:$0xff]  ;;  %v1907_v52 = vld [vmem:[%s1740_s18 + $0x80] sm:$0xff] }
  0x1a   : > { %1532 = vmatmul.msk.f32.gmra.mxu3 %vm335_vm0, %v1782_v16  ;;  %403 = vmatpush.msra.mxu2 %v331_v47  ;;  %v890_v53 = vld [vmem:[%s2299_s1 + $0x50] sm:$0xff]  ;;  %v580_v54 = vrot.slane %v1907_v52, 1  ;;  %v1914_v55 = vld [vmem:[%s1740_s18 + $0xa0] sm:$0xff]  ;;  %v1554_v57 = vld [vmem:[%s2300_s2 + $0x78] sm:$0xff] }
  0x1b   : > { %1516 = vmatmul.msk.f32.gmra.mxu0 %vm335_vm0, %v1803_v22  ;;  %v1553_v58 = vld [vmem:[%s2300_s2 + $0x70] sm:$0xff]  ;;  %681 = vmatpush.msra.mxu3 %v1554_v57  ;;  %v1931_v59 = vld [vmem:[%s1740_s18 + $0xa8] sm:$0xff]  ;;  %v1559_v63 = vld [vmem:[%s2300_s2 + $0x80] sm:$0xff] }
  0x1c   : > { %942 = vperm.xlu2 %1656, %v888_v25   ;;  %551 = vmatpush.msrb.mxu0 %v1535_v42  ;;  %v581_v56 = vsel %vm422_vm1, %v578_v46, %v580_v54  ;;  %v1560_v62 = vld [vmem:[%s2300_s2 + $0x88] sm:$0xff]  ;;  %v316_v2 = vld [vmem:[%s1740_s18 + $0x50] sm:$0xff]  ;;  %v1523_v4 = vld [vmem:[%s2300_s2 + $0x20] sm:$0xff] }
  0x1d   : > { %947 = vperm.xlu1 %1655, %v889_v12   ;;  %404 = vmatpush.msra.mxu2 %v330_v48  ;;  %v1524_v3 = vld [vmem:[%s2300_s2 + $0x28] sm:$0xff]  ;;  %v317_v8 = vld [vmem:[%s1740_s18 + $0x58] sm:$0xff]  ;;  %v431_v12 = vsel %vm422_vm1, %v428_v6, %v430_v9  ;;  %v1020_v15 = vld [vmem:[%s2304_s6] sm:$0xff] }
  0x1e   : > { %917 = vperm.xlu0 %1654, %v883_v13   ;;  %1519 = vmatmul.msk.f32.vlgmr.msra.gmra.mxu2 %vm335_vm0, %v1743_v5  ;;  %v429_v5 = vsel %vm422_vm1, %v426_v61, %v428_v6  ;;  %v1021_v13 = vld [vmem:[%s2304_s6 + $0x8] sm:$0xff]  ;;  %v898_v25 = vld [vmem:[%s2299_s1 + $0xa0] sm:$0xff]  ;;  %v1590_v47 = vld [vmem:[%s2304_s6 + $0x18] sm:$0xff] }
  0x1f   : > { %682 = vmatpush.msra.mxu3 %v1553_v58  ;;  %722 = vmatpush.msra.mxu0 %v1560_v62  ;;  %v892_v20 = vld [vmem:[%s2299_s1 + $0x68] sm:$0xff]  ;;  %v2024_v29 = vld [vmem:[%s2303_s5] ss:$0 sm:$0xff] }
  0x20   : > { %1567 = vmatmul.msk.f32.gmra.mxu1 %vm335_vm0, %v1789_v18  ;;  %454 = vmatpush.msrb.mxu2 %v1524_v3 }
  0x21   : > { %723 = vmatpush.msra.mxu0 %v1559_v63 }
  0x22   : > { %1533 = vmatmul.msk.f32.gmra.mxu3 %vm335_vm0, %v1800_v21  ;;  %455 = vmatpush.msrb.mxu2 %v1523_v4 }
  0x23   : > { %1517 = vmatmul.msk.f32.gmra.mxu0 %vm335_vm0, %v1824_v27 }
  0x24   : > { %922 = vperm.xlu2 %1656, %v884_v34  }
  0x25   : > { %982 = vperm.xlu1 %1655, %v896_v19  }
  0x26   : > { %957 = vperm.xlu0 %1654, %v891_v36   ;;  %1520 = vmatmul.msk.f32.gmra.mxu2 %vm335_vm0, %v1765_v11 }
  0x28   : > { %1568 = vmatmul.msk.f32.gmra.mxu1 %vm335_vm0, %v1810_v23 }
  0x2a   : > { %1534 = vmatmul.msk.f32.gmra.mxu3 %vm335_vm0, %v1821_v26 }
  0x2b   : > { %1518 = vmatmul.msk.f32.gmra.mxu0 %vm335_vm0, %v1854_v37 }
  0x2c   : > { %962 = vperm.xlu2 %1656, %v892_v20  }
  0x2d   : > { %967 = vperm.xlu1 %1655, %v893_v24   ;;  %v1547_v24 = vld [vmem:[%s2300_s2 + $0x60] sm:$0xff] }
  0x2e   : > { %987 = vperm.xlu0 %1654, %v897_v43   ;;  %1521 = vmatmul.msk.f32.gmra.mxu2 %vm335_vm0, %v1789_v18 }
  0x30   : > { %1569 = vmatmul.msk.f32.gmra.mxu1 %vm335_vm0, %v1831_v28 }
  0x32   : > { %1543 = vmatmul.msk.f32.vlgmr.msrb.gmra.mxu3 %vm335_vm0, %v575_v35  ;;  %v323_v35 = vld [vmem:[%s1740_s18 + $0x88] sm:$0xff] }
  0x33   : > { %1537 = vmatmul.msk.f32.vlgmr.msrb.gmra.mxu0 %vm335_vm0, %v1879_v45  ;;  %1092 = vmatpush.msrb.mxu3 %v1021_v13 }
  0x34   : > { %992 = vperm.xlu2 %1656, %v898_v25  }
  0x35   : > { %997 = vperm.xlu1 %1655, %v899_v31   ;;  %1093 = vmatpush.msrb.mxu3 %v1020_v15 }
  0x36   : > { %972 = vperm.xlu0 %1654, %v894_v49   ;;  %1522 = vmatmul.msk.f32.gmra.mxu2 %vm335_vm0, %v1810_v23 }
  0x38   : > { %1570 = vmatmul.msk.f32.gmra.mxu1 %vm335_vm0, %v1860_v38 }
  0x3a   : > { %1544 = vmatmul.msk.f32.gmra.mxu3 %vm335_vm0, %v577_v44 }
  0x3b   : > { %1538 = vmatmul.msk.f32.gmra.mxu0 %vm335_vm0, %v1897_v51 }
  0x3d   : > { %927 = vperm.xlu1 %1655, %v885_v40  }
  0x3e   : > { %952 = vperm.xlu0 %1654, %v890_v53   ;;  %1525 = vmatmul.msk.f32.vlgmr.msrb.gmra.mxu2 %vm335_vm0, %v425_v7 }
  0x40   : > { %1571 = vmatmul.msk.f32.gmra.mxu1 %vm335_vm0, %v312_v17  ;;  %v705_v17 = vsel %vm422_vm1, %v430_v9, %v704_v14 }
  0x42   : > { %1545 = vmatmul.msk.f32.gmra.mxu3 %vm335_vm0, %v579_v50 }
  0x43   : > { %1539 = vmatmul.msk.f32.gmra.mxu0 %vm335_vm0, %v1914_v55 }
  0x46   : > { %1526 = vmatmul.msk.f32.gmra.mxu2 %vm335_vm0, %v427_v0 }
  0x48   : > { %1572 = vmatmul.msk.f32.gmra.mxu1 %vm335_vm0, %v1803_v22 }
  0x4a   : > { %1546 = vmatmul.msk.f32.gmra.mxu3 %vm335_vm0, %v581_v56 }
  0x4b   : > { %1540 = vmatmul.msk.f32.gmra.mxu0 %vm335_vm0, %v1931_v59 }
  0x4e   : > { %1527 = vmatmul.msk.f32.gmra.mxu2 %vm335_vm0, %v429_v5 }
  0x50   : > { %1573 = vmatmul.msk.f32.gmra.mxu1 %vm335_vm0, %v1824_v27 }
  0x52   : > { %1555 = vmatmul.msk.f32.vlgmr.msra.gmra.mxu3 %vm335_vm0, %v1803_v22  ;;  %v1599_v22 = vld [vmem:[%s2304_s6 + $0x20] sm:$0xff] }
  0x53   : > { %1561 = vmatmul.msk.f32.vlgmr.msra.gmra.mxu0 %vm335_vm0, %v427_v0 }
  0x56   : > { %1528 = vmatmul.msk.f32.gmra.mxu2 %vm335_vm0, %v431_v12 }
  0x58   : > { %1574 = vmatmul.msk.f32.gmra.mxu1 %vm335_vm0, %v1854_v37 }
  0x5a   : > { %1556 = vmatmul.msk.f32.gmra.mxu3 %vm335_vm0, %v1824_v27 }
  0x5b   : > { %1562 = vmatmul.msk.f32.gmra.mxu0 %vm335_vm0, %v429_v5 }
  0x60   : > { %1575 = vmatmul.msk.f32.gmra.mxu1 %vm335_vm0, %v316_v2 }
  0x62   : > { %1557 = vmatmul.msk.f32.gmra.mxu3 %vm335_vm0, %v1854_v37 }
  0x63   : > { %1563 = vmatmul.msk.f32.gmra.mxu0 %vm335_vm0, %v431_v12 }
  0x68   : > { %1576 = vmatmul.msk.f32.gmra.mxu1 %vm335_vm0, %v317_v8 }
  0x6a   : > { %1558 = vmatmul.msk.f32.gmra.mxu3 %vm335_vm0, %v316_v2 }
  0x6b   : > { %1564 = vmatmul.msk.f32.gmra.mxu0 %vm335_vm0, %v705_v17 }
  0x6e   : > { %v913_v40 = vpop.permute.xlu2 %912 }
  0x70   : > { %1577 = vmatmul.msk.f32.gmra.mxu1 %vm335_vm0, %v1760_v10  ;;  %v1600_v10 = vld [vmem:[%s2304_s6 + $0x28] sm:$0xff] }
  0x71   : > { %1142 = vmatpush.msrb.mxu0 %v1600_v10 }
  0x73   : > { %1143 = vmatpush.msrb.mxu0 %v1599_v22 }
  0x78   : > { %1578 = vmatmul.msk.f32.gmra.mxu1 %vm335_vm0, %v1782_v16  ;;  %v1548_v16 = vld [vmem:[%s2300_s2 + $0x68] sm:$0xff] }
  0x79   : > { %642 = vmatpush.msra.mxu2 %v1548_v16 }
  0x7b   : > { %643 = vmatpush.msra.mxu2 %v1547_v24 }
  0x7c   : > { %1549 = vmatmul.msk.f32.vlgmr.msra.gmra.mxu2 %vm335_vm0, %v1765_v11  ;;  %v895_v11 = vld [vmem:[%s2299_s1 + $0x80] sm:$0xff] }
  0x7d   : > { %977 = vperm.xlu2 %1656, %v895_v11   ;;  %1051 = vmatpush.msrb.mxu2 %v1590_v47 }
  0x7f   : > { %v908_v19 = vpop.permute.xlu1 %907 }
  0x80   : > { %1579 = vmatmul.msk.f32.gmra.mxu1 %vm335_vm0, %v1800_v21  ;;  %v2015_v27 = vpop.permute.xlu0 %932 }
  0x84   : > { %1550 = vmatmul.msk.f32.gmra.mxu2 %vm335_vm0, %v1789_v18 }
  0x87   : > { %v2017_v21 = vpop.permute.xlu1 %937 }
  0x88   : > { %1580 = vmatmul.msk.f32.gmra.mxu1 %vm335_vm0, %v1821_v26  ;;  %v903_v32 = vpop.permute.xlu0 %902 }
  0x8c   : > { %1551 = vmatmul.msk.f32.gmra.mxu2 %vm335_vm0, %v1810_v23 }
  0x8d   : > { %v792_v30 = vpop.f32.mrf.mxu1 }
  0x8e   : > { %v793_v31 = vadd.f32 %v2024_v29, %v792_v30 }
  0x8f   : > { %v2032_v33 = vpop.permute.xlu1 %947 }
  0x90   : > { %v860_v26 = vmax.f32 %v793_v31, 0.0  ;;  %1581 = vmatmul.msk.f32.gmra.mxu1 %vm335_vm0, %v1907_v52  ;;  %v943_v52 = vpop.permute.xlu2 %942  ;;  %v918_v56 = vpop.permute.xlu0 %917 }
  0x91   : > { %v365_v7 = vpop.f32.mrf.mxu0 }
  0x92   : > { %v1000_v34 = vmul.f32 %v903_v32, %v860_v26 }
  0x94   : > { %1595 = vmatmul.msk.f32.vlgmr.msrb.gmra.mxu3 %vm335_vm0, %v1000_v34  ;;  %v1111_v41 = vrot.slane %v1000_v34, 1  ;;  %1552 = vmatmul.msk.f32.gmra.mxu2 %vm335_vm0, %v1831_v28  ;;  %v1589_v28 = vld [vmem:[%s2304_s6 + $0x10] sm:$0xff] }
  0x95   : > { %v795_v18 = vpop.f32.mrf.mxu1  ;;  %1052 = vmatpush.msrb.mxu2 %v1589_v28  ;;  %v2094_v3 = vpop.f32.mrf.mxu3  ;;  %v1618_v28 = vld [vmem:[%s2304_s6 + $0x58] sm:$0xff] }
  0x96   : > { %v796_v36 = vadd.f32 %v2024_v29, %v795_v18  ;;  %1292 = vmatpush.msra.mxu0 %v1618_v28 }
  0x97   : > { %v2042_v38 = vpop.permute.xlu1 %982 }
  0x98   : > { %v861_v37 = vmax.f32 %v796_v36, 0.0  ;;  %1582 = vmatmul.msk.f32.gmra.mxu1 %vm335_vm0, %v323_v35  ;;  %v923_v1 = vpop.permute.xlu2 %922  ;;  %v1606_v35 = vld [vmem:[%s2304_s6 + $0x38] sm:$0xff] }
  0x99   : > { %1190 = vmatpush.msra.mxu2 %v1606_v35 }
  0x9a   : > { %v2044_v39 = vmul.f32 %v908_v19, %v861_v37  ;;  %v368_v19 = vpop.f32.mrf.mxu0 }
  0x9c   : > { %v1112_v42 = vrot.slane %v2044_v39, 1  ;;  %1596 = vmatmul.msk.f32.gmra.mxu3 %vm335_vm0, %v2044_v39 }
  0x9d   : > { %v798_v23 = vpop.f32.mrf.mxu1  ;;  %v2105_v15 = vpop.f32.mrf.mxu3 }
  0x9e   : > { %v799_v43 = vadd.f32 %v2024_v29, %v798_v23  ;;  %v1113_v44 = vsel %vm422_vm1, %v1111_v41, %v1112_v42 }
  0x9f   : > { %1601 = vmatmul.msk.f32.vlgmr.msrb.gmra.mxu0 %vm335_vm0, %v1113_v44  ;;  %v2064_v49 = vpop.permute.xlu1 %967 }
  0xa0   : > { %v862_v46 = vmax.f32 %v799_v43, 0.0  ;;  %1583 = vmatmul.msk.f32.gmra.mxu1 %vm335_vm0, %v1879_v45 }
  0xa1   : > { %v406_v25 = vpop.f32.mrf.mxu2 }
  0xa2   : > { %v2059_v48 = vmul.f32 %v913_v40, %v862_v46  ;;  %v407_v30 = vadd.f32 %v406_v25, %v365_v7  ;;  %v371_v31 = vpop.f32.mrf.mxu0 }
  0xa4   : > { %v1114_v50 = vrot.slane %v2059_v48, 1  ;;  %1597 = vmatmul.msk.f32.gmra.mxu3 %vm335_vm0, %v2059_v48 }
  0xa5   : > { %v801_v45 = vpop.f32.mrf.mxu1 }
  0xa6   : > { %v802_v53 = vadd.f32 %v2024_v29, %v801_v45  ;;  %v2071_v54 = vsel %vm422_vm1, %v1112_v42, %v1114_v50 }
  0xa7   : > { %1602 = vmatmul.msk.f32.gmra.mxu0 %vm335_vm0, %v2071_v54  ;;  %v2082_v62 = vpop.permute.xlu1 %997 }
  0xa8   : > { %v863_v57 = vmax.f32 %v802_v53, 0.0  ;;  %1584 = vmatmul.msk.f32.gmra.mxu1 %vm335_vm0, %v1897_v51 }
  0xa9   : > { %v409_v34 = vpop.f32.mrf.mxu2 }
  0xaa   : > { %v2077_v58 = vmul.f32 %v918_v56, %v863_v57  ;;  %v374_v40 = vpop.f32.mrf.mxu0  ;;  %v410_v41 = vadd.f32 %v409_v34, %v368_v19  ;;  %v1612_v57 = vld [vmem:[%s2304_s6 + $0x48] sm:$0xff] }
  0xab   : > { %1238 = vmatpush.msra.mxu3 %v1612_v57  ;;  %v1636_v34 = vld [vmem:[%s2304_s6 + $0x88] sm:$0xff]  ;;  %v1630_v57 = vld [vmem:[%s2304_s6 + $0x78] sm:$0xff] }
  0xac   : > { %v1116_v60 = vrot.slane %v2077_v58, 1  ;;  %1598 = vmatmul.msk.f32.gmra.mxu3 %vm335_vm0, %v2077_v58 }
  0xad   : > { %v804_v61 = vpop.f32.mrf.mxu1 }
  0xae   : > { %v805_v63 = vadd.f32 %v2024_v29, %v804_v61  ;;  %v2086_v0 = vsel %vm422_vm1, %v1114_v50, %v1116_v60 }
  0xaf   : > { %1603 = vmatmul.msk.f32.gmra.mxu0 %vm335_vm0, %v2086_v0  ;;  %v928_v9 = vpop.permute.xlu1 %927 }
  0xb0   : > { %v864_v51 = vmax.f32 %v805_v63, 0.0  ;;  %1585 = vmatmul.msk.f32.gmra.mxu1 %vm335_vm0, %v1914_v55 }
  0xb1   : > { %v412_v43 = vpop.f32.mrf.mxu2 }
  0xb2   : > { %v2092_v2 = vmul.f32 %v923_v1, %v864_v51  ;;  %v413_v50 = vadd.f32 %v412_v43, %v371_v31  ;;  %v2145_v45 = vpop.f32.mrf.mxu0  ;;  %v963_v31 = vpop.permute.xlu2 %962 }
  0xb4   : > { %v1118_v4 = vrot.slane %v2092_v2, 1 }
  0xb5   : > { %v807_v6 = vpop.f32.mrf.mxu1 }
  0xb6   : > { %v808_v5 = vadd.f32 %v2024_v29, %v807_v6  ;;  %v2099_v8 = vsel %vm422_vm1, %v1116_v60, %v1118_v4 }
  0xb7   : > { %1604 = vmatmul.msk.f32.gmra.mxu0 %vm335_vm0, %v2099_v8 }
  0xb8   : > { %v865_v12 = vmax.f32 %v808_v5, 0.0  ;;  %1586 = vmatmul.msk.f32.gmra.mxu1 %vm335_vm0, %v1931_v59  ;;  %v2114_v59 = vpop.f32.mrf.mxu3 }
  0xb9   : > { %v415_v53 = vpop.f32.mrf.mxu2 }
  0xba   : > { %v1005_v55 = vmul.f32 %v928_v9, %v865_v12  ;;  %v416_v56 = vadd.f32 %v415_v53, %v374_v40  ;;  %v2157_v63 = vpop.f32.mrf.mxu0  ;;  %v1624_v12 = vld [vmem:[%s2304_s6 + $0x68] sm:$0xff]  ;;  %v1635_v40 = vld [vmem:[%s2304_s6 + $0x80] sm:$0xff] }
  0xbc   : > { %v1392_v13 = vrot.slane %v1005_v55, 1  ;;  %v958_v55 = vpop.permute.xlu0 %957 }
  0xbd   : > { %v810_v14 = vpop.f32.mrf.mxu1 }
  0xbe   : > { %v811_v17 = vadd.f32 %v2024_v29, %v810_v14  ;;  %v2109_v10 = vsel %vm422_vm1, %v1118_v4, %v1392_v13 }
  0xc0   : > { %v866_v20 = vmax.f32 %v811_v17, 0.0  ;;  %v2125_v36 = vpop.f32.mrf.mxu3  ;;  %v1623_v17 = vld [vmem:[%s2304_s6 + $0x60] sm:$0xff] }
  0xc1   : > { %v457_v1 = vpop.f32.mrf.mxu2 }
  0xc2   : > { %v1006_v22 = vmul.f32 %v2015_v27, %v866_v20  ;;  %v469_v51 = vadd.f32 %v457_v1, %v407_v30  ;;  %v2165_v13 = vpop.f32.mrf.mxu0  ;;  %v1611_v20 = vld [vmem:[%s2304_s6 + $0x40] sm:$0xff] }
  0xc3   : > { %1239 = vmatpush.msra.mxu3 %v1611_v20 }
  0xc4   : > { %1591 = vmatmul.msk.f32.vlgmr.msrb.gmra.mxu2 %vm335_vm0, %v1006_v22 }
  0xc5   : > { %v813_v16 = vpop.f32.mrf.mxu1  ;;  %1369 = vmatpush.msrb.mxu3 %v1630_v57 }
  0xc6   : > { %v814_v24 = vadd.f32 %v2024_v29, %v813_v16 }
  0xc8   : > { %v867_v11 = vmax.f32 %v814_v24, 0.0  ;;  %v2138_v47 = vpop.f32.mrf.mxu3 }
  0xc9   : > { %v460_v5 = vpop.f32.mrf.mxu2 }
  0xca   : > { %v2117_v32 = vmul.f32 %v2017_v21, %v867_v11  ;;  %v1605_v21 = vld [vmem:[%s2304_s6 + $0x30] sm:$0xff]  ;;  %v470_v19 = vadd.f32 %v460_v5, %v410_v41 }
  0xcb   : > { %1191 = vmatpush.msra.mxu2 %v1605_v21 }
  0xcc   : > { %1592 = vmatmul.msk.f32.gmra.mxu2 %vm335_vm0, %v2117_v32 }
  0xcd   : > { %v816_v26 = vpop.f32.mrf.mxu1  ;;  %1330 = vmatpush.msrb.mxu2 %v1624_v12 }
  0xce   : > { %v817_v27 = vadd.f32 %v2024_v29, %v816_v26 }
  0xcf   : > { %1331 = vmatpush.msrb.mxu2 %v1623_v17 }
  0xd0   : > { %v868_v18 = vmax.f32 %v817_v27, 0.0  ;;  %v2155_v60 = vpop.f32.mrf.mxu3  ;;  %v2177_v27 = vpop.f32.mrf.mxu0 }
  0xd1   : > { %v463_v24 = vpop.f32.mrf.mxu2 }
  0xd2   : > { %v2127_v37 = vmul.f32 %v943_v52, %v868_v18  ;;  %v471_v11 = vadd.f32 %v463_v24, %v413_v50 }
  0xd4   : > { %1593 = vmatmul.msk.f32.gmra.mxu2 %vm335_vm0, %v2127_v37 }
  0xd5   : > { %v819_v42 = vpop.f32.mrf.mxu1 }
  0xd6   : > { %v820_v23 = vadd.f32 %v2024_v29, %v819_v42 }
  0xd8   : > { %v869_v44 = vmax.f32 %v820_v23, 0.0  ;;  %v2160_v7 = vpop.f32.mrf.mxu3  ;;  %v2188_v23 = vpop.permute.xlu0 %987 }
  0xd9   : > { %v466_v43 = vpop.f32.mrf.mxu2 }
  0xda   : > { %v2136_v46 = vmul.f32 %v2032_v33, %v869_v44  ;;  %v1617_v33 = vld [vmem:[%s2304_s6 + $0x50] sm:$0xff]  ;;  %v472_v50 = vadd.f32 %v466_v43, %v416_v56 }
  0xdb   : > { %1293 = vmatpush.msra.mxu0 %v1617_v33 }
  0xdc   : > { %1594 = vmatmul.msk.f32.gmra.mxu2 %vm335_vm0, %v2136_v46 }
  0xdd   : > { %v2147_v52 = vpop.f32.mrf.mxu1  ;;  %1410 = vmatpush.msrb.mxu0 %v1636_v34 }
  0xdf   : > { %1411 = vmatpush.msrb.mxu0 %v1635_v40 }
  0xe0   : > { %v2175_v30 = vpop.f32.mrf.mxu3  ;;  %v973_v12 = vpop.permute.xlu0 %972 }
  0xe5   : > { %v825_v61 = vpop.f32.mrf.mxu1 }
  0xe6   : > { %v725_v61 = vpop.f32.mrf.mxu0 }
  0xe8   : > { %v684_v33 = vpop.f32.mrf.mxu3 }
  0xed   : > { %v827_v4 = vpop.f32.mrf.mxu1 }
  0xee   : > { %v828_v6 = vadd.f32 %v2024_v29, %v827_v4 }
  0xf0   : > { %v871_v9 = vmax.f32 %v828_v6, 0.0  ;;  %v517_v6 = vadd.f32 %v2094_v3, %v469_v51  ;;  %v518_v51 = vadd.f32 %v2105_v15, %v470_v19  ;;  %v1629_v19 = vld [vmem:[%s2304_s6 + $0x70] sm:$0xff] }
  0xf1   : > { %1370 = vmatpush.msrb.mxu3 %v1629_v19 }
  0xf2   : > { %v1011_v14 = vmul.f32 %v958_v55, %v871_v9  ;;  %v2199_v9 = vpop.permute.xlu2 %992 }
  0xf4   : > { %1607 = vmatmul.msk.f32.vlgmr.msra.gmra.mxu2 %vm335_vm0, %v1011_v14  ;;  %v1261_v18 = vrot.slane %v1011_v14, 1  ;;  %v565_v14 = vadd.f32 %v2145_v45, %v517_v6 }
  0xf5   : > { %v830_v22 = vpop.f32.mrf.mxu1 }
  0xf6   : > { %v831_v16 = vadd.f32 %v2024_v29, %v830_v22  ;;  %v619_v20 = vadd.f32 %v2138_v47, %v565_v14  ;;  %v687_v22 = vpop.f32.mrf.mxu3  ;;  %v566_v47 = vadd.f32 %v2157_v63, %v518_v51 }
  0xf8   : > { %v872_v25 = vmax.f32 %v831_v16, 0.0  ;;  %v620_v15 = vadd.f32 %v2155_v60, %v566_v47 }
  0xfa   : > { %v1012_v26 = vmul.f32 %v963_v31, %v872_v25  ;;  %v728_v31 = vpop.f32.mrf.mxu0 }
  0xfc   : > { %v1262_v35 = vrot.slane %v1012_v26, 1  ;;  %1608 = vmatmul.msk.f32.gmra.mxu2 %vm335_vm0, %v1012_v26 }
  0xfd   : > { %v833_v21 = vpop.f32.mrf.mxu1 }
  0xfe   : > { %v834_v41 = vadd.f32 %v2024_v29, %v833_v21  ;;  %v1263_v42 = vsel %vm422_vm1, %v1261_v18, %v1262_v35  ;;  %v978_v18 = vpop.permute.xlu2 %977 }
  0xff   : > { %1619 = vmatmul.msk.f32.vlgmr.msra.gmra.mxu0 %vm335_vm0, %v1263_v42  ;;  %v519_v42 = vadd.f32 %v2114_v59, %v471_v11 }
 0x100   : > { %v873_v44 = vmax.f32 %v834_v41, 0.0 }
 0x101   : > { %v567_v57 = vadd.f32 %v2165_v13, %v519_v42 }
 0x102   : > { %v1013_v28 = vmul.f32 %v2064_v49, %v873_v44  ;;  %v645_v49 = vpop.f32.mrf.mxu2 }
 0x103   : > { %v657_v25 = vadd.f32 %v645_v49, %v619_v20  ;;  %v621_v59 = vadd.f32 %v2160_v7, %v567_v57 }
 0x104   : > { %v1264_v53 = vrot.slane %v1013_v28, 1  ;;  %1609 = vmatmul.msk.f32.gmra.mxu2 %vm335_vm0, %v1013_v28  ;;  %v690_v28 = vpop.f32.mrf.mxu3 }
 0x105   : > { %v836_v1 = vpop.f32.mrf.mxu1  ;;  %v696_v45 = vadd.f32 %v684_v33, %v657_v25  ;;  %v520_v33 = vadd.f32 %v2125_v36, %v472_v50 }
 0x106   : > { %v837_v4 = vadd.f32 %v2024_v29, %v836_v1  ;;  %v1265_v5 = vsel %vm422_vm1, %v1262_v35, %v1264_v53 }
 0x107   : > { %1620 = vmatmul.msk.f32.gmra.mxu0 %vm335_vm0, %v1265_v5  ;;  %v2209_v21 = vadd.f32 %v725_v61, %v696_v45  ;;  %v568_v11 = vadd.f32 %v2177_v27, %v520_v33 }
 0x108   : > { %v874_v56 = vmax.f32 %v837_v4, 0.0 }
 0x109   : > { %v622_v6 = vadd.f32 %v2175_v30, %v568_v11 }
 0x10a   : > { %v1014_v55 = vmul.f32 %v973_v12, %v874_v56  ;;  %v648_v26 = vpop.f32.mrf.mxu2 }
 0x10b   : > { %v658_v44 = vadd.f32 %v648_v26, %v620_v15 }
 0x10c   : > { %v1266_v17 = vrot.slane %v1014_v55, 1  ;;  %1610 = vmatmul.msk.f32.gmra.mxu2 %vm335_vm0, %v1014_v55  ;;  %v693_v49 = vpop.f32.mrf.mxu3 }
 0x10d   : > { %v839_v16 = vpop.f32.mrf.mxu1 }
 0x10e   : > { %v840_v3 = vadd.f32 %v2024_v29, %v839_v16  ;;  %v1267_v24 = vsel %vm422_vm1, %v1264_v53, %v1266_v17  ;;  %v731_v53 = vpop.f32.mrf.mxu0  ;;  %v328_v16 = vld [vmem:[%s1740_s18 + $0xb0] sm:$0xff] }
 0x10f   : > { %1621 = vmatmul.msk.f32.gmra.mxu0 %vm335_vm0, %v1267_v24  ;;  %1587 = vmatmul.msk.f32.gmra.mxu1 %vm335_vm0, %v328_v16 }
 0x110   : > { %v875_v34 = vmax.f32 %v840_v3, 0.0 }
 0x112   : > { %v1015_v35 = vmul.f32 %v978_v18, %v875_v34  ;;  %v651_v63 = vpop.f32.mrf.mxu2 }
 0x113   : > { %v659_v4 = vadd.f32 %v651_v63, %v621_v59 }
 0x114   : > { %v1268_v40 = vrot.slane %v1015_v35, 1  ;;  %1625 = vmatmul.msk.f32.vlgmr.msrb.gmra.mxu2 %vm335_vm0, %v2044_v39  ;;  %v697_v39 = vadd.f32 %v687_v22, %v658_v44 }
 0x115   : > { %v842_v41 = vpop.f32.mrf.mxu1  ;;  %v698_v5 = vadd.f32 %v690_v28, %v659_v4 }
 0x116   : > { %v1269_v43 = vsel %vm422_vm1, %v1266_v17, %v1268_v40  ;;  %v2222_v60 = vadd.f32 %v728_v31, %v697_v39  ;;  %v734_v27 = vpop.f32.mrf.mxu0 }
 0x117   : > { %1622 = vmatmul.msk.f32.gmra.mxu0 %vm335_vm0, %v1269_v43  ;;  %v2234_v56 = vadd.f32 %v731_v53, %v698_v5  ;;  %v1095_v31 = vpop.f32.mrf.mxu3 }
 0x11a   : > { %v654_v36 = vpop.f32.mrf.mxu2 }
 0x11b   : > { %v660_v13 = vadd.f32 %v654_v36, %v622_v6 }
 0x11c   : > { %1626 = vmatmul.msk.f32.gmra.mxu2 %vm335_vm0, %v2059_v48 }
 0x11d   : > { %v844_v61 = vpop.f32.mrf.mxu1  ;;  %v699_v7 = vadd.f32 %v693_v49, %v660_v13 }
 0x11e   : > { %v845_v1 = vadd.f32 %v2024_v29, %v844_v61  ;;  %v1145_v24 = vpop.f32.mrf.mxu0 }
 0x11f   : > { %1637 = vmatmul.msk.f32.vlgmr.msrb.gmra.mxu0 %vm335_vm0, %v2071_v54  ;;  %v2239_v30 = vadd.f32 %v734_v27, %v699_v7  ;;  %v1098_v45 = vpop.f32.mrf.mxu3 }
 0x120   : > { %v876_v50 = vmax.f32 %v845_v1, 0.0 }
 0x122   : > { %v1016_v48 = vmul.f32 %v2042_v38, %v876_v50  ;;  %v1658_v50 = vld [vmem:[%s2301_s3] ss:$0 sm:$0xff] }
 0x124   : > { %1613 = vmatmul.msk.f32.vlgmr.msra.gmra.mxu3 %vm335_vm0, %v1016_v48  ;;  %1627 = vmatmul.msk.f32.gmra.mxu2 %vm335_vm0, %v2077_v58 }
 0x125   : > { %v847_v12 = vpop.f32.mrf.mxu1 }
 0x126   : > { %v848_v54 = vadd.f32 %v2024_v29, %v847_v12  ;;  %v1148_v25 = vpop.f32.mrf.mxu0  ;;  %v1659_v12 = vld [vmem:[%s2305_s7] ss:$0 sm:$0xff] }
 0x127   : > { %1638 = vmatmul.msk.f32.gmra.mxu0 %vm335_vm0, %v2086_v0  ;;  %v1101_v35 = vpop.f32.mrf.mxu3 }
 0x128   : > { %v877_v55 = vmax.f32 %v848_v54, 0.0  ;;  %v745_v54 = vadd.f32 %v1658_v50, %v2209_v21 }
 0x12a   : > { %v1017_v38 = vmul.f32 %v2188_v23, %v877_v55 }
 0x12c   : > { %1614 = vmatmul.msk.f32.gmra.mxu3 %vm335_vm0, %v1017_v38  ;;  %1628 = vmatmul.msk.f32.gmra.mxu2 %vm335_vm0, %v2092_v2 }
 0x12d   : > { %v850_v14 = vpop.f32.mrf.mxu1 }
 0x12e   : > { %v851_v58 = vadd.f32 %v2024_v29, %v850_v14  ;;  %v1151_v34 = vpop.f32.mrf.mxu0 }
 0x12f   : > { %1639 = vmatmul.msk.f32.gmra.mxu0 %vm335_vm0, %v2099_v8  ;;  %v329_v8 = vld [vmem:[%s1740_s18 + $0xb8] sm:$0xff]  ;;  %v1104_v47 = vpop.f32.mrf.mxu3 }
 0x130   : > { %v878_v17 = vmax.f32 %v851_v58, 0.0  ;;  %1588 = vmatmul.msk.f32.gmra.mxu1 %vm335_vm0, %v329_v8 }
 0x132   : > { %v1018_v20 = vmul.f32 %v2199_v9, %v878_v17  ;;  %v953_v9 = vpop.permute.xlu0 %952 }
 0x134   : > { %1615 = vmatmul.msk.f32.gmra.mxu3 %vm335_vm0, %v1018_v20 }
 0x135   : > { %v853_v0 = vpop.f32.mrf.mxu1 }
 0x136   : > { %v854_v23 = vadd.f32 %v2024_v29, %v853_v0  ;;  %v1154_v18 = vpop.f32.mrf.mxu0  ;;  %v749_v0 = vmax.f32 %v745_v54, 0.0 }
 0x137   : > { %1640 = vmatmul.msk.f32.gmra.mxu0 %vm335_vm0, %v2109_v10  ;;  %v823_v10 = vadd.f32 %v2024_v29, %v2147_v52 }
 0x138   : > { %v879_v22 = vmax.f32 %v854_v23, 0.0 }
 0x13a   : > { %v1019_v2 = vmul.f32 %v2082_v62, %v879_v22  ;;  %v870_v62 = vmax.f32 %v823_v10, 0.0 }
 0x13c   : > { %1616 = vmatmul.msk.f32.gmra.mxu3 %vm335_vm0, %v1019_v2  ;;  %v1010_v3 = vmul.f32 %v953_v9, %v870_v62  ;;  %v746_v9 = vadd.f32 %v1658_v50, %v2222_v60  ;;  %v747_v60 = vadd.f32 %v1658_v50, %v2234_v56 }
 0x144   : > { %1631 = vmatmul.msk.f32.vlgmr.msrb.gmra.mxu3 %vm335_vm0, %v2117_v32 }
 0x147   : > { %v1054_v51 = vpop.f32.mrf.mxu2 }
 0x148   : > { %v1096_v44 = vadd.f32 %v1095_v31, %v1054_v51 }
 0x14a   : > { %v1157_v33 = vadd.f32 %v1145_v24, %v1096_v44 }
 0x14c   : > { %1632 = vmatmul.msk.f32.gmra.mxu3 %vm335_vm0, %v2127_v37 }
 0x14f   : > { %v1057_v32 = vpop.f32.mrf.mxu2 }
 0x150   : > { %v1099_v53 = vadd.f32 %v1098_v45, %v1057_v32 }
 0x152   : > { %v1158_v1 = vadd.f32 %v1148_v25, %v1099_v53 }
 0x154   : > { %1633 = vmatmul.msk.f32.gmra.mxu3 %vm335_vm0, %v2136_v46 }
 0x157   : > { %v1060_v26 = vpop.f32.mrf.mxu2 }
 0x158   : > { %v1102_v5 = vadd.f32 %v1101_v35, %v1060_v26  ;;  %v750_v26 = vmax.f32 %v746_v9, 0.0 }
 0x15a   : > { %v1159_v38 = vadd.f32 %v1151_v34, %v1102_v5 }
 0x15c   : > { %1634 = vmatmul.msk.f32.gmra.mxu3 %vm335_vm0, %v1010_v3 }
 0x15f   : > { %v1063_v37 = vpop.f32.mrf.mxu2 }
 0x160   : > { %v1105_v22 = vadd.f32 %v1104_v47, %v1063_v37 }
 0x162   : > { %v1160_v3 = vadd.f32 %v1154_v18, %v1105_v22 }
 0x177   : > { %v1193_v29 = vpop.f32.mrf.mxu2 }
 0x178   : > { %v1205_v39 = vadd.f32 %v1193_v29, %v1157_v33 }
 0x17c   : > { %v1295_v52 = vpop.f32.mrf.mxu0 }
 0x17f   : > { %v1196_v46 = vpop.f32.mrf.mxu2 }
 0x180   : > { %v1206_v36 = vadd.f32 %v1196_v46, %v1158_v1 }
 0x184   : > { %v1298_v40 = vpop.f32.mrf.mxu0 }
 0x187   : > { %v1199_v19 = vpop.f32.mrf.mxu2 }
 0x188   : > { %v1207_v17 = vadd.f32 %v1199_v19, %v1159_v38  ;;  %v751_v19 = vmax.f32 %v747_v60, 0.0 }
 0x18c   : > { %v1301_v41 = vpop.f32.mrf.mxu0  ;;  %v856_v59 = vpop.f32.mrf.mxu1 }
 0x18f   : > { %v1202_v43 = vpop.f32.mrf.mxu2 }
 0x190   : > { %v1208_v25 = vadd.f32 %v1202_v43, %v1160_v3 }
 0x194   : > { %v1304_v63 = vpop.f32.mrf.mxu0 }
 0x197   : > { %v1333_v11 = vpop.f32.mrf.mxu2 }
 0x19c   : > { %v1413_v6 = vpop.f32.mrf.mxu0 }
 0x19f   : > { %v1336_v55 = vpop.f32.mrf.mxu2 }
 0x1a4   : > { %v1416_v23 = vpop.f32.mrf.mxu0 }
 0x1a7   : > { %v1241_v15 = vpop.f32.mrf.mxu3  ;;  %v1339_v32 = vpop.f32.mrf.mxu2 }
 0x1a8   : > { %v1253_v57 = vadd.f32 %v1241_v15, %v1205_v39  ;;  %v748_v39 = vadd.f32 %v1658_v50, %v2239_v30 }
 0x1aa   : > { %v1307_v4 = vadd.f32 %v1295_v52, %v1253_v57 }
 0x1ac   : > { %v1345_v49 = vadd.f32 %v1333_v11, %v1307_v4  ;;  %v1419_v35 = vpop.f32.mrf.mxu0 }
 0x1ad   : > { %v858_v48 = vpop.f32.mrf.mxu1 }
 0x1af   : > { %v1244_v42 = vpop.f32.mrf.mxu3  ;;  %v1342_v15 = vpop.f32.mrf.mxu2 }
 0x1b0   : > { %v1254_v13 = vadd.f32 %v1244_v42, %v1206_v36 }
 0x1b2   : > { %v1308_v14 = vadd.f32 %v1298_v40, %v1254_v13 }
 0x1b4   : > { %v1346_v8 = vadd.f32 %v1336_v55, %v1308_v14  ;;  %v1422_v33 = vpop.f32.mrf.mxu0 }
 0x1b7   : > { %v1247_v28 = vpop.f32.mrf.mxu3 }
 0x1b8   : > { %v1255_v2 = vadd.f32 %v1247_v28, %v1207_v17 }
 0x1ba   : > { %v1309_v51 = vadd.f32 %v1301_v41, %v1255_v2 }
 0x1bc   : > { %v1347_v37 = vadd.f32 %v1339_v32, %v1309_v51 }
 0x1bf   : > { %v1250_v61 = vpop.f32.mrf.mxu3 }
 0x1c0   : > { %v1256_v34 = vadd.f32 %v1250_v61, %v1208_v25 }
 0x1c2   : > { %v1310_v18 = vadd.f32 %v1304_v63, %v1256_v34  ;;  %v752_v63 = vmax.f32 %v748_v39, 0.0 }
 0x1c4   : > { %v1348_v42 = vadd.f32 %v1342_v15, %v1310_v18 }
 0x1c7   : > { %v1372_v7 = vpop.f32.mrf.mxu3 }
 0x1c8   : > { %v1384_v27 = vadd.f32 %v1372_v7, %v1345_v49 }
 0x1ca   : > { %v1425_v58 = vadd.f32 %v1413_v6, %v1384_v27 }
 0x1cc   : > { %v1433_v20 = vadd.f32 %v1659_v12, %v1425_v58 }
 0x1ce   : > { %v1437_v16 = vmax.f32 %v1433_v20, 0.0 }
 0x1cf   : > { %v1375_v21 = vpop.f32.mrf.mxu3 }
 0x1d0   : > { %v1441_v10 = vadd.f32 %v1437_v16, %v749_v0  ;;  %v1385_v62 = vadd.f32 %v1375_v21, %v1346_v8 }
 0x1d2   : > { %1446 = vst.msk [vmem:[%s2282_s21] sm:$0xff] %vm1445_vm2, %v1441_v10  ;;  %v1426_v24 = vadd.f32 %v1416_v23, %v1385_v62 }
 0x1d4   : > { %v1434_v31 = vadd.f32 %v1659_v12, %v1426_v24 }
 0x1d6   : > { %v1438_v45 = vmax.f32 %v1434_v31, 0.0 }
 0x1d7   : > { %v1378_v29 = vpop.f32.mrf.mxu3 }
 0x1d8   : > { %v1442_v52 = vadd.f32 %v1438_v45, %v750_v26  ;;  %v1386_v47 = vadd.f32 %v1378_v29, %v1347_v37 }
 0x1da   : > { %1447 = vst.msk [vmem:[%s2282_s21 + $0x8] sm:$0xff] %vm1445_vm2, %v1442_v52  ;;  %v1427_v46 = vadd.f32 %v1419_v35, %v1386_v47 }
 0x1dc   : > { %v1435_v40 = vadd.f32 %v1659_v12, %v1427_v46 }
 0x1de   : > { %v1439_v41 = vmax.f32 %v1435_v40, 0.0 }
 0x1df   : > { %v1381_v43 = vpop.f32.mrf.mxu3 }
 0x1e0   : > { %v1443_v44 = vadd.f32 %v1439_v41, %v751_v19  ;;  %v1387_v28 = vadd.f32 %v1381_v43, %v1348_v42 }
 0x1e2   : > { %1448 = vst.msk [vmem:[%s2282_s21 + $0x10] sm:$0xff] %vm1445_vm2, %v1443_v44  ;;  %v1428_v53 = vadd.f32 %v1422_v33, %v1387_v28 }
 0x1e4   : > { %v1436_v56 = vadd.f32 %v1659_v12, %v1428_v53 }
 0x1e6   : > { %v1440_v57 = vmax.f32 %v1436_v56, 0.0 }
 0x1e8   : > { %v1444_v59 = vadd.f32 %v1440_v57, %v752_v63 }
 0x1ea   : > { %1449 = vst.msk [vmem:[%s2282_s21 + $0x18] sm:$0xff] %vm1445_vm2, %v1444_v59 }
 0x1eb PF: > { %s18_s27 = sadd.s32 1, %s1666_s27  }
 0x1ec   : > { %p15_p4 = scmp.ge.s32.totalorder %s18_s27, 4  }
 0x1ee   :  { %17 = sbr.rel (!%p15_p4) target bundleno = 1 (0x1), region = 98 }

</bundles_post_ra>
